<compile_context>
chip_gen: v7x
topology: tpu7x:2x2x1
jax: 0.10.0
libtpu: 0.0.40
codegen_flags: <defaults>
</compile_context>

<pallas_src>
import functools
import math

import jax
import jax.numpy as jnp
from jax import lax
from jax.experimental import pallas as pl
from jax.experimental.pallas import tpu as pltpu


def _round_up(a, b):
    return (a + b - 1) // b * b


def _cdiv(a, b):
    return (a + b - 1) // b


def _conv_bn_relu_kernel(x_ref, w_ref, b_ref, o_ref, *, kh, kw, stride, tr, ow):
    """One output row-tile.

    x_ref: (1, H_in, W_in, C_pad)  whole padded image (resident across row tiles)
    w_ref: (KH*KW, C_pad, OC_pad)  BN-scaled weights, one (C, OC) matrix per tap
    b_ref: (1, OC_pad)             BN bias (f32)
    o_ref: (1, TR*OW, OC_pad)      lane-dense output tile
    """
    mb = pl.program_id(1)
    halo = (tr - 1) * stride + kh          # input rows needed by this tile
    r0 = mb * (tr * stride)                # first input row of this tile
    if (tr * stride) % 8 == 0:
        r0 = pl.multiple_of(r0, 8)

    c = x_ref.shape[-1]
    oc_pad = o_ref.shape[-1]
    prec = lax.Precision.HIGHEST if x_ref.dtype == jnp.float32 else None

    x_slab = x_ref[0, pl.ds(r0, halo), :, :]          # (halo, W_in, C_pad) in VMEM

    acc = jnp.zeros((tr * ow, oc_pad), jnp.float32)
    for i in range(kh):
        for j in range(kw):
            tap = lax.slice(
                x_slab,
                (i, j, 0),
                (i + (tr - 1) * stride + 1, j + (ow - 1) * stride + 1, c),
                (stride, stride, 1))                   # (tr, ow, C_pad)
            acc = acc + jnp.dot(tap.reshape(tr * ow, c), w_ref[i * kw + j],
                                precision=prec,
                                preferred_element_type=jnp.float32)

    y = acc + b_ref[...]                               # f32 bias, broadcast over rows
    o_ref[0] = jnp.maximum(y, 0.0).astype(o_ref.dtype)


def conv_layer_forward(x_nchw, weight_oihw, gamma, beta, running_mean, running_var,
                       *, stride=1, padding=0, eps=1e-5, compute_dtype=jnp.bfloat16):
    """ConvLayer.forward: Conv2d(bias=False) -> BatchNorm2d(eval) -> ReLU."""
    n, c, h, w = x_nchw.shape
    oc, c_in, kh, kw = weight_oihw.shape
    assert c == c_in
    oh = (h + 2 * padding - kh) // stride + 1
    ow = (w + 2 * padding - kw) // stride + 1

    # ---- fold BatchNorm (inference) into weights + per-channel bias ----
    scale = (gamma / jnp.sqrt(running_var + eps)).astype(jnp.float32)   # (OC,)
    bias = (beta - running_mean * scale).astype(jnp.float32)            # (OC,)
    # (OC, C, KH, KW) -> (KH, KW, C, OC) -> (KH*KW, C, OC), BN scale baked in.
    w_taps = (jnp.transpose(weight_oihw, (2, 3, 1, 0)).astype(jnp.float32)
              .reshape(kh * kw, c, oc) * scale[None, None, :])

    # ---- TPU-friendly padding of channel dims ----
    c_pad = _round_up(c, 8)
    oc_pad = _round_up(oc, 128) if oc <= 128 else _round_up(oc, 256)

    # ---- output row-tile selection ----
    target_m = 1024                                     # output positions per step
    tr = max(1, min(oh, target_m // max(ow, 1)))
    nb = _cdiv(oh, tr)
    tr = _cdiv(oh, nb)                                  # even split -> minimal tail waste
    if n * nb < 2 and oh >= 2:                          # keep >= 2 steps for v7x megacore
        nb = 2
        tr = _cdiv(oh, nb)
    align = 8 // math.gcd(ow, 8)                        # make TR*OW a sublane multiple
    tr = _round_up(tr, align)
    nb = _cdiv(oh, tr)
    oh_pad = tr * nb
    m_tile = tr * ow
    m_pad = oh_pad * ow

    # ---- input: NCHW -> NHWC, spatial zero-pad (+ rows covering padded tail tile) ----
    x_nhwc = jnp.transpose(x_nchw, (0, 2, 3, 1))
    h_needed = (oh_pad - 1) * stride + kh
    bottom = max(0, h_needed - h - padding)
    x_pad = jnp.pad(x_nhwc, ((0, 0), (padding, bottom), (padding, padding),
                             (0, c_pad - c))).astype(compute_dtype)
    h_in, w_in = x_pad.shape[1], x_pad.shape[2]

    w_taps = jnp.pad(w_taps, ((0, 0), (0, c_pad - c),
                              (0, oc_pad - oc))).astype(compute_dtype)
    bias2d = jnp.pad(bias, (0, oc_pad - oc)).reshape(1, oc_pad)

    # ---- explicit VMEM budget (double-buffered blocks) ----
    def tiled_bytes(shape, dt):
        nbytes = jnp.dtype(dt).itemsize
        sub = 8 if nbytes == 4 else 16
        lead = 1
        for d in shape[:-2]:
            lead *= d
        return lead * _round_up(shape[-2], sub) * _round_up(shape[-1], 128) * nbytes

    est = 2 * (tiled_bytes((1, h_in, w_in, c_pad), compute_dtype)
               + tiled_bytes((kh * kw, c_pad, oc_pad), compute_dtype)
               + tiled_bytes((1, oc_pad), jnp.float32)
               + tiled_bytes((1, m_tile, oc_pad), x_nchw.dtype))
    vmem_limit = int(min(max(2 * est + (4 << 20), 16 << 20), 64 << 20))

    kernel = functools.partial(_conv_bn_relu_kernel, kh=kh, kw=kw, stride=stride,
                               tr=tr, ow=ow)

    out = pl.pallas_call(
        kernel,
        out_shape=jax.ShapeDtypeStruct((n, m_pad, oc_pad), x_nchw.dtype),
        grid_spec=pltpu.PrefetchScalarGridSpec(
            num_scalar_prefetch=0,
            grid=(n, nb),
            in_specs=[
                # Whole padded image per batch; block index is constant along the
                # row-tile axis, so it is DMA'd from HBM only once per batch.
                pl.BlockSpec((1, h_in, w_in, c_pad), lambda b, mb: (b, 0, 0, 0)),
                pl.BlockSpec((kh * kw, c_pad, oc_pad), lambda b, mb: (0, 0, 0)),
                pl.BlockSpec((1, oc_pad), lambda b, mb: (0, 0)),
            ],
            out_specs=pl.BlockSpec((1, m_tile, oc_pad), lambda b, mb: (b, mb, 0)),
        ),
        compiler_params=pltpu.CompilerParams(
            dimension_semantics=("parallel", "parallel"),
            vmem_limit_bytes=vmem_limit),
    )(x_pad, w_taps, bias2d)

    # Drop OC / row padding, restore spatial layout, back to NCHW (PyTorch layout).
    out = out[:, :oh * ow, :oc].reshape(n, oh, ow, oc)
    return jnp.transpose(out, (0, 3, 1, 2))


def reference_forward(x_nchw, weight_oihw, gamma, beta, running_mean, running_var,
                      *, stride=1, padding=0, eps=1e-5):
    """Plain-JAX reference (same semantics as the PyTorch module in eval mode)."""
    y = lax.conv_general_dilated(
        x_nchw, weight_oihw,
        window_strides=(stride, stride),
        padding=[(padding, padding), (padding, padding)],
        dimension_numbers=("NCHW", "OIHW", "NCHW"),
        precision=lax.Precision.HIGHEST,
    )
    scale = gamma / jnp.sqrt(running_var + eps)
    bias = beta - running_mean * scale
    y = y * scale[None, :, None, None] + bias[None, :, None, None]
    return jnp.maximum(y, 0.0)


if __name__ == "__main__":
    # ConvLayer(in_channels=4, out_channels=8, kernel_size=3, stride=1, padding=1)
    N, C, H, W = 2, 4, 16, 16
    OC, K, STRIDE, PAD = 8, 3, 1, 1

    key = jax.random.PRNGKey(0)
    kx, kw_, kg, kb, km, kv = jax.random.split(key, 6)

    x = jax.random.normal(kx, (N, C, H, W), dtype=jnp.float32)
    weight = 0.1 * jax.random.normal(kw_, (OC, C, K, K), dtype=jnp.float32)  # Conv2d.weight
    gamma = 1.0 + 0.1 * jax.random.normal(kg, (OC,), dtype=jnp.float32)      # bn.weight
    beta = 0.1 * jax.random.normal(kb, (OC,), dtype=jnp.float32)             # bn.bias
    running_mean = 0.1 * jax.random.normal(km, (OC,), dtype=jnp.float32)
    running_var = 1.0 + 0.1 * jax.random.uniform(kv, (OC,), dtype=jnp.float32)

    ref = reference_forward(x, weight, gamma, beta, running_mean, running_var,
                            stride=STRIDE, padding=PAD)

    # bf16 MXU path (default / fast): f32 accumulation, loose tolerance.
    out_bf16 = conv_layer_forward(x, weight, gamma, beta, running_mean, running_var,
                                  stride=STRIDE, padding=PAD,
                                  compute_dtype=jnp.bfloat16)
    out_bf16 = jax.block_until_ready(out_bf16)
    assert out_bf16.shape == (N, OC, H, W), out_bf16.shape
    assert jnp.allclose(out_bf16, ref, atol=5e-2, rtol=5e-2), "bf16 path mismatch"

    # f32 path: tight tolerance against the reference.
    out_f32 = conv_layer_forward(x, weight, gamma, beta, running_mean, running_var,
                                 stride=STRIDE, padding=PAD,
                                 compute_dtype=jnp.float32)
    out_f32 = jax.block_until_ready(out_f32)
    assert out_f32.shape == (N, OC, H, W), out_f32.shape
    assert jnp.allclose(out_f32, ref, atol=1e-4, rtol=1e-4), "f32 path mismatch"

    print("KERNEL_OK")
</pallas_src>

<mosaic_0001>
module attributes {stable_mosaic.version = 11 : i64} {
  func.func @_conv_bn_relu_kernel(%arg0: i32, %arg1: i32, %arg2: memref<1x18x18x8xbf16, #tpu.memory_space<vmem>>, %arg3: memref<9x8x128xbf16, #tpu.memory_space<vmem>>, %arg4: memref<1x128xf32, #tpu.memory_space<vmem>>, %arg5: memref<1x256x128xf32, #tpu.memory_space<vmem>>) attributes {dimension_semantics = [#tpu.dimension_semantics<parallel>, #tpu.dimension_semantics<parallel>], iteration_bounds = array<i64: 2, 1>, scalar_prefetch = 0 : i64, scratch_operands = 0 : i64, tpu.core_type = #tpu.core_type<tc>, window_params = [{transform_indices = @transform_0, window_bounds = array<i64: 1, 18, 18, 8>}, {pipeline_mode = #tpu.pipeline_mode<synchronous>, transform_indices = @transform_1, window_bounds = array<i64: 9, 8, 128>}, {pipeline_mode = #tpu.pipeline_mode<synchronous>, transform_indices = @transform_2, window_bounds = array<i64: 1, 128>}, {transform_indices = @transform_3, window_bounds = array<i64: 1, 256, 128>}]} {
    %c16_i32 = arith.constant 16 : i32
    %0 = arith.muli %arg1, %c16_i32 : i32
    %1 = tpu.assume_multiple %0, 8 : i32
    %c0 = arith.constant 0 : index
    %2 = arith.index_cast %1 : i32 to index
    %c0_0 = arith.constant 0 : index
    %c0_1 = arith.constant 0 : index
    %3 = vector.load %arg2[%c0, %2, %c0_0, %c0_1] : memref<1x18x18x8xbf16, #tpu.memory_space<vmem>>, vector<1x18x18x8xbf16>
    %4 = vector.shape_cast %3 : vector<1x18x18x8xbf16> to vector<18x18x8xbf16>
    %cst = arith.constant 0.000000e+00 : f32
    %5 = vector.broadcast %cst : f32 to vector<256x128xf32>
    %6 = vector.extract_strided_slice %4 {offsets = [0, 0, 0], sizes = [16, 16, 8], strides = [1, 1, 1]} : vector<18x18x8xbf16> to vector<16x16x8xbf16>
    %7 = vector.shape_cast %6 : vector<16x16x8xbf16> to vector<256x8xbf16>
    %c0_2 = arith.constant 0 : index
    %c0_3 = arith.constant 0 : index
    %c0_4 = arith.constant 0 : index
    %8 = vector.load %arg3[%c0_2, %c0_3, %c0_4] : memref<9x8x128xbf16, #tpu.memory_space<vmem>>, vector<1x8x128xbf16>
    %9 = vector.shape_cast %8 : vector<1x8x128xbf16> to vector<8x128xbf16>
    %cst_5 = arith.constant dense<0.000000e+00> : vector<256x128xf32>
    %10 = tpu.matmul %7, %9, %cst_5 {dimension_numbers = #tpu.dot_dimension_numbers<[1], [0], [0], [1], [0, 0, 1, 1], [], []>} : vector<256x8xbf16>, vector<8x128xbf16>, vector<256x128xf32> -> vector<256x128xf32>
    %11 = arith.addf %5, %10 : vector<256x128xf32>
    %12 = vector.extract_strided_slice %4 {offsets = [0, 1, 0], sizes = [16, 16, 8], strides = [1, 1, 1]} : vector<18x18x8xbf16> to vector<16x16x8xbf16>
    %13 = vector.shape_cast %12 : vector<16x16x8xbf16> to vector<256x8xbf16>
    %c1 = arith.constant 1 : index
    %c0_6 = arith.constant 0 : index
    %c0_7 = arith.constant 0 : index
    %14 = vector.load %arg3[%c1, %c0_6, %c0_7] : memref<9x8x128xbf16, #tpu.memory_space<vmem>>, vector<1x8x128xbf16>
    %15 = vector.shape_cast %14 : vector<1x8x128xbf16> to vector<8x128xbf16>
    %cst_8 = arith.constant dense<0.000000e+00> : vector<256x128xf32>
    %16 = tpu.matmul %13, %15, %cst_8 {dimension_numbers = #tpu.dot_dimension_numbers<[1], [0], [0], [1], [0, 0, 1, 1], [], []>} : vector<256x8xbf16>, vector<8x128xbf16>, vector<256x128xf32> -> vector<256x128xf32>
    %17 = arith.addf %11, %16 : vector<256x128xf32>
    %18 = vector.extract_strided_slice %4 {offsets = [0, 2, 0], sizes = [16, 16, 8], strides = [1, 1, 1]} : vector<18x18x8xbf16> to vector<16x16x8xbf16>
    %19 = vector.shape_cast %18 : vector<16x16x8xbf16> to vector<256x8xbf16>
    %c2 = arith.constant 2 : index
    %c0_9 = arith.constant 0 : index
    %c0_10 = arith.constant 0 : index
    %20 = vector.load %arg3[%c2, %c0_9, %c0_10] : memref<9x8x128xbf16, #tpu.memory_space<vmem>>, vector<1x8x128xbf16>
    %21 = vector.shape_cast %20 : vector<1x8x128xbf16> to vector<8x128xbf16>
    %cst_11 = arith.constant dense<0.000000e+00> : vector<256x128xf32>
    %22 = tpu.matmul %19, %21, %cst_11 {dimension_numbers = #tpu.dot_dimension_numbers<[1], [0], [0], [1], [0, 0, 1, 1], [], []>} : vector<256x8xbf16>, vector<8x128xbf16>, vector<256x128xf32> -> vector<256x128xf32>
    %23 = arith.addf %17, %22 : vector<256x128xf32>
    %24 = vector.extract_strided_slice %4 {offsets = [1, 0, 0], sizes = [16, 16, 8], strides = [1, 1, 1]} : vector<18x18x8xbf16> to vector<16x16x8xbf16>
    %25 = vector.shape_cast %24 : vector<16x16x8xbf16> to vector<256x8xbf16>
    %c3 = arith.constant 3 : index
    %c0_12 = arith.constant 0 : index
    %c0_13 = arith.constant 0 : index
    %26 = vector.load %arg3[%c3, %c0_12, %c0_13] : memref<9x8x128xbf16, #tpu.memory_space<vmem>>, vector<1x8x128xbf16>
    %27 = vector.shape_cast %26 : vector<1x8x128xbf16> to vector<8x128xbf16>
    %cst_14 = arith.constant dense<0.000000e+00> : vector<256x128xf32>
    %28 = tpu.matmul %25, %27, %cst_14 {dimension_numbers = #tpu.dot_dimension_numbers<[1], [0], [0], [1], [0, 0, 1, 1], [], []>} : vector<256x8xbf16>, vector<8x128xbf16>, vector<256x128xf32> -> vector<256x128xf32>
    %29 = arith.addf %23, %28 : vector<256x128xf32>
    %30 = vector.extract_strided_slice %4 {offsets = [1, 1, 0], sizes = [16, 16, 8], strides = [1, 1, 1]} : vector<18x18x8xbf16> to vector<16x16x8xbf16>
    %31 = vector.shape_cast %30 : vector<16x16x8xbf16> to vector<256x8xbf16>
    %c4 = arith.constant 4 : index
    %c0_15 = arith.constant 0 : index
    %c0_16 = arith.constant 0 : index
    %32 = vector.load %arg3[%c4, %c0_15, %c0_16] : memref<9x8x128xbf16, #tpu.memory_space<vmem>>, vector<1x8x128xbf16>
    %33 = vector.shape_cast %32 : vector<1x8x128xbf16> to vector<8x128xbf16>
    %cst_17 = arith.constant dense<0.000000e+00> : vector<256x128xf32>
    %34 = tpu.matmul %31, %33, %cst_17 {dimension_numbers = #tpu.dot_dimension_numbers<[1], [0], [0], [1], [0, 0, 1, 1], [], []>} : vector<256x8xbf16>, vector<8x128xbf16>, vector<256x128xf32> -> vector<256x128xf32>
    %35 = arith.addf %29, %34 : vector<256x128xf32>
    %36 = vector.extract_strided_slice %4 {offsets = [1, 2, 0], sizes = [16, 16, 8], strides = [1, 1, 1]} : vector<18x18x8xbf16> to vector<16x16x8xbf16>
    %37 = vector.shape_cast %36 : vector<16x16x8xbf16> to vector<256x8xbf16>
    %c5 = arith.constant 5 : index
    %c0_18 = arith.constant 0 : index
    %c0_19 = arith.constant 0 : index
    %38 = vector.load %arg3[%c5, %c0_18, %c0_19] : memref<9x8x128xbf16, #tpu.memory_space<vmem>>, vector<1x8x128xbf16>
    %39 = vector.shape_cast %38 : vector<1x8x128xbf16> to vector<8x128xbf16>
    %cst_20 = arith.constant dense<0.000000e+00> : vector<256x128xf32>
    %40 = tpu.matmul %37, %39, %cst_20 {dimension_numbers = #tpu.dot_dimension_numbers<[1], [0], [0], [1], [0, 0, 1, 1], [], []>} : vector<256x8xbf16>, vector<8x128xbf16>, vector<256x128xf32> -> vector<256x128xf32>
    %41 = arith.addf %35, %40 : vector<256x128xf32>
    %42 = vector.extract_strided_slice %4 {offsets = [2, 0, 0], sizes = [16, 16, 8], strides = [1, 1, 1]} : vector<18x18x8xbf16> to vector<16x16x8xbf16>
    %43 = vector.shape_cast %42 : vector<16x16x8xbf16> to vector<256x8xbf16>
    %c6 = arith.constant 6 : index
    %c0_21 = arith.constant 0 : index
    %c0_22 = arith.constant 0 : index
    %44 = vector.load %arg3[%c6, %c0_21, %c0_22] : memref<9x8x128xbf16, #tpu.memory_space<vmem>>, vector<1x8x128xbf16>
    %45 = vector.shape_cast %44 : vector<1x8x128xbf16> to vector<8x128xbf16>
    %cst_23 = arith.constant dense<0.000000e+00> : vector<256x128xf32>
    %46 = tpu.matmul %43, %45, %cst_23 {dimension_numbers = #tpu.dot_dimension_numbers<[1], [0], [0], [1], [0, 0, 1, 1], [], []>} : vector<256x8xbf16>, vector<8x128xbf16>, vector<256x128xf32> -> vector<256x128xf32>
    %47 = arith.addf %41, %46 : vector<256x128xf32>
    %48 = vector.extract_strided_slice %4 {offsets = [2, 1, 0], sizes = [16, 16, 8], strides = [1, 1, 1]} : vector<18x18x8xbf16> to vector<16x16x8xbf16>
    %49 = vector.shape_cast %48 : vector<16x16x8xbf16> to vector<256x8xbf16>
    %c7 = arith.constant 7 : index
    %c0_24 = arith.constant 0 : index
    %c0_25 = arith.constant 0 : index
    %50 = vector.load %arg3[%c7, %c0_24, %c0_25] : memref<9x8x128xbf16, #tpu.memory_space<vmem>>, vector<1x8x128xbf16>
    %51 = vector.shape_cast %50 : vector<1x8x128xbf16> to vector<8x128xbf16>
    %cst_26 = arith.constant dense<0.000000e+00> : vector<256x128xf32>
    %52 = tpu.matmul %49, %51, %cst_26 {dimension_numbers = #tpu.dot_dimension_numbers<[1], [0], [0], [1], [0, 0, 1, 1], [], []>} : vector<256x8xbf16>, vector<8x128xbf16>, vector<256x128xf32> -> vector<256x128xf32>
    %53 = arith.addf %47, %52 : vector<256x128xf32>
    %54 = vector.extract_strided_slice %4 {offsets = [2, 2, 0], sizes = [16, 16, 8], strides = [1, 1, 1]} : vector<18x18x8xbf16> to vector<16x16x8xbf16>
    %55 = vector.shape_cast %54 : vector<16x16x8xbf16> to vector<256x8xbf16>
    %c8 = arith.constant 8 : index
    %c0_27 = arith.constant 0 : index
    %c0_28 = arith.constant 0 : index
    %56 = vector.load %arg3[%c8, %c0_27, %c0_28] : memref<9x8x128xbf16, #tpu.memory_space<vmem>>, vector<1x8x128xbf16>
    %57 = vector.shape_cast %56 : vector<1x8x128xbf16> to vector<8x128xbf16>
    %cst_29 = arith.constant dense<0.000000e+00> : vector<256x128xf32>
    %58 = tpu.matmul %55, %57, %cst_29 {dimension_numbers = #tpu.dot_dimension_numbers<[1], [0], [0], [1], [0, 0, 1, 1], [], []>} : vector<256x8xbf16>, vector<8x128xbf16>, vector<256x128xf32> -> vector<256x128xf32>
    %59 = arith.addf %53, %58 : vector<256x128xf32>
    %c0_30 = arith.constant 0 : index
    %c0_31 = arith.constant 0 : index
    %60 = vector.load %arg4[%c0_30, %c0_31] : memref<1x128xf32, #tpu.memory_space<vmem>>, vector<1x128xf32>
    %61 = vector.broadcast %60 : vector<1x128xf32> to vector<256x128xf32>
    %62 = arith.addf %59, %61 : vector<256x128xf32>
    %cst_32 = arith.constant 0.000000e+00 : f32
    %63 = vector.broadcast %cst_32 : f32 to vector<256x128xf32>
    %64 = arith.maximumf %62, %63 : vector<256x128xf32>
    %c0_33 = arith.constant 0 : index
    %c0_34 = arith.constant 0 : index
    %c0_35 = arith.constant 0 : index
    %65 = vector.load %arg5[%c0_33, %c0_34, %c0_35] : memref<1x256x128xf32, #tpu.memory_space<vmem>>, vector<1x256x128xf32>
    %66 = vector.shape_cast %65 : vector<1x256x128xf32> to vector<256x128xf32>
    %67 = vector.shape_cast %64 : vector<256x128xf32> to vector<1x256x128xf32>
    tpu.vector_store %arg5[%c0_33, %c0_34, %c0_35], %67 {strides = array<i32>} : memref<1x256x128xf32, #tpu.memory_space<vmem>>, vector<1x256x128xf32>,
    return
  }
  func.func @transform_0(%arg0: i32, %arg1: i32) -> (i32, i32, i32, i32) {
    %c0_i32 = arith.constant 0 : i32
    %c0_i32_0 = arith.constant 0 : i32
    %c0_i32_1 = arith.constant 0 : i32
    %c0_i32_2 = arith.constant 0 : i32
    return %arg0, %c0_i32, %c0_i32_0, %c0_i32_1 : i32, i32, i32, i32
  }
  func.func @transform_1(%arg0: i32, %arg1: i32) -> (i32, i32, i32) {
    %c0_i32 = arith.constant 0 : i32
    %c0_i32_0 = arith.constant 0 : i32
    %c0_i32_1 = arith.constant 0 : i32
    %c0_i32_2 = arith.constant 0 : i32
    return %c0_i32, %c0_i32_0, %c0_i32_1 : i32, i32, i32
  }
  func.func @transform_2(%arg0: i32, %arg1: i32) -> (i32, i32) {
    %c0_i32 = arith.constant 0 : i32
    %c0_i32_0 = arith.constant 0 : i32
    %c0_i32_1 = arith.constant 0 : i32
    return %c0_i32, %c0_i32_0 : i32, i32
  }
  func.func @transform_3(%arg0: i32, %arg1: i32) -> (i32, i32, i32) {
    %c0_i32 = arith.constant 0 : i32
    %c0_i32_0 = arith.constant 0 : i32
    return %arg0, %arg1, %c0_i32 : i32, i32, i32
  }
}

</mosaic_0001>

<bundles_post_ra>
// kernel: tpu_custom_call.1
= control target key start
LH: loop header
LB: loop body
LE: loop exit
PB: predicated region body
PF: predicated region fallthrough
CT: control target
= control target key end

     0   :  { %8 = vsyncpa [#allocation3], 0  ;;  %s5398_s0 = inlined_call_operand.vmem [shape: bf16[2,18,18,8], index: 0, kind: input, shape index: {}]   ;;  %s5399_s1 = inlined_call_operand.vmem [shape: bf16[9,8,128], index: 1, kind: input, shape index: {}]   ;;  %s5400_s2 = inlined_call_operand.vmem [shape: f32[1,128], index: 2, kind: input, shape index: {}]   ;;  %s5401_s3 = inlined_call_operand.hbm [shape: f32[2,256,128], index: 3, kind: output, shape index: {}]  }
   0x1   :  { %10 = vsyncpa [#allocation3 + $0x1], 0  ;;  %s4246_s12 = smov 0   ;;  %s4248_s13 = smov 0  }
   0x2   :  { %s4250_s14 = smov 0   ;;  %s4252_s15 = smov 0  }
   0x3   :  { %s4254_s16 = smov 0   ;;  %s4256_s17 = smov 0  }
   0x4 LB: > { %s3098_s18 = sadd.s32 4294967295, %s4221_s17   ;;  %s3099_s19 = sadd.s32 4294967294, %s4221_s17   ;;  %s4221_s17 = sphi %s4256_s17, %s16_s17   ;;  %s4217_s16 = sphi %s4254_s16, %s5485_s16   ;;  %s4213_s15 = sphi %s4252_s15, %s5484_s15   ;;  %s4209_s14 = sphi %s4250_s14, %s5483_s14   ;;  %s4205_s13 = sphi %s4248_s13, %s5482_s13   ;;  %s4201_s12 = sphi %s4246_s12, %s5481_s12  }
   0x5   : > { %s28_s20 = sadd.s32 1, %s4217_s16  ;;  %s105_s21 = sadd.s32 1, %s4209_s14 }
   0x6   : > { %p30_p0 = scmp.ge.s32.totalorder %s28_s20, 2  ;;  %p115_p1 = scmp.ne.s32.totalorder %s4209_s14, %s4205_s13 }
   0x7   : > { %p116_p2 = scmp.eq.s32.totalorder %s3098_s18, 1  ;;  %p121_p3 = scmp.ne.s32.totalorder %s4205_s13, %s4201_s12 }
   0x8   : > { %s5487_s20 = smov (%p30_p0, %s28_s20), 0  ;;  %p122_p5 = scmp.eq.s32.totalorder %s3099_s19, 1 }
   0x9   : > { %p4286_p4 = por %p116_p2, %p115_p1  ;;  %s100_s23 = ssub.s32 %s4217_s16, %s5487_s20 }
   0xa   : > { %p3102_p6 = scmp.ge.s32.totalorder %s4221_s17, 1  ;;  %p103_p7 = scmp.eq.s32.totalorder %s100_s23, 0 }
   0xb   : > { %p4293_p8 = por %p122_p5, %p121_p3  ;;  %p154_p9 = scmp.lt.s32.totalorder %s4221_s17, 3 }
   0xc   : > { %s4299_s25 = scalar_select %p103_p7, %s4209_s14, %s105_s21  }
   0xd   : > { %p155_p10 = pnand %p3102_p6, %p154_p9 }
   0xf   : > { %158 = sbr.rel (%p155_p10) target bundleno = 577 (0x241), region = 32 }
  0x16   : > { %v3105_v0 = vld [vmem:[%s5399_s1 + $0x4] sm:$0xf]  ;;  %vm730_vm0 = vcmask 1043456   ;;  %v3237_v1 = vld [vmem:[%s5399_s1 + $0x10] sm:$0xf]  ;;  %p178_p11 = scmp.lt.s32.totalorder %s4213_s15, 1 }
  0x17   : > { %4053 = vmatprep.subr.msk.bf16.mxu1 %vm730_vm0, %v3105_v0  ;;  %4057 = vmatprep.subr.msk.bf16.mxu0 %vm730_vm0, %v3237_v1  ;;  %v732_v2 = vsel %vm730_vm0, %v3105_v0, 0  ;;  %v4312_v3 = vsel %vm730_vm0, %v3237_v1, 0  ;;  %v243_v4 = vld [vmem:[%s5399_s1] sm:$0xf]  ;;  %v3256_v5 = vld [vmem:[%s5399_s1 + $0x14] sm:$0xf] }
  0x18   : > { %5435 = vst [vmem:[#allocation5_spill] sm:$0xff] %v4312_v3  ;;  %3490 = vmatpush3.bf16.msra.mxu1 %v732_v2  ;;  %3626 = vmatpush3.bf16.msra.mxu0 %v4312_v3  ;;  %s179_s30 = scalar_select %p178_p11, %s4213_s15, 1  ;;  %vm244_vm1 = vsmask.f32 3328  ;;  %vm245_vm2 = vsmask.f32 7440 }
  0x19   : > { %4054 = vmatprep.subr.msk.bf16.mxu1 %vm730_vm0, %v243_v4  ;;  %4059 = vmatprep.subr.msk.bf16.mxu0 %vm730_vm0, %v3256_v5  ;;  %v4330_v6 = vsel %vm730_vm0, %v243_v4, 0  ;;  %v4333_v7 = vsel %vm730_vm0, %v3256_v5, 0  ;;  %v4338_v8 = vld [vmem:[%s5399_s1 + $0x18] sm:$0xf]  ;;  %vm681_vm3 = vcmask 64512   ;;  %vm4374_vm4 = vmor %vm244_vm1, %vm245_vm2  ;;  %vm1203_vm5 = vcmask 1042432  }
  0x1a   : > { %s4063_s8 = smul.u32 216, %s179_s30  ;;  %v4362_v20 = vsel %vm730_vm0, %v4338_v8, 0  ;;  %vm1204_vm6 = vcmask 1046532   ;;  %s175_s7 = sand.u32 1, %s4205_s13  }
  0x1b   : > { %vm4555_vm7 = vmor %vm1203_vm5, %vm1204_vm6  ;;  %s3103_s10 = sshll.u32 %s175_s7, 8  ;;  %s3335_s18 = sshll.u32 %s4213_s15, 12 }
  0x1c   : > { %s4327_s11 = scalar_lea.vmem %s5398_s0, %s4063_s8  ;;  %s5343_s26 = scalar_lea.hbm %s5401_s3, %s3335_s18 }
  0x1d   : > { %v4341_v9 = vld [vmem:[%s4327_s11] sm:$0xf]  ;;  %v4344_v10 = vld [vmem:[%s4327_s11 + $0x4] sm:$0xf]  ;;  %v191_v11 = vld [vmem:[%s4327_s11 + $0x8] sm:$0x1] }
  0x1e   : > { %v248_v12 = vshrl.u32 %v4341_v9, 16  ;;  %v251_v13 = vshll.u32 %v4341_v9, 16  ;;  %v257_v14 = vshll.u32 %v4344_v10, 16  ;;  %v261_v15 = vshrl.u32 %v4344_v10, 16  ;;  %v4352_v16 = vld [vmem:[%s4327_s11 + $0xc] sm:$0xf] }
  0x1f   : > { %v267_v17 = vshll.u32 %v191_v11, 16  ;;  %v4355_v18 = vld [vmem:[%s4327_s11 + $0x10] sm:$0xf]  ;;  %v4358_v19 = vld [vmem:[%s4327_s11 + $0x14] sm:$0x1]  ;;  %v272_v26 = vshrl.u32 %v4352_v16, 16 }
  0x20   : > { %v250_v21 = vrot.slane %v248_v12, 4  ;;  %v253_v22 = vrot.slane %v251_v13, 5  ;;  %v259_v23 = vrot.slane %v257_v14, 5  ;;  %v263_v24 = vrot.slane %v261_v15, 4  ;;  %v4370_v33 = vld [vmem:[%s4327_s11 + $0x18] sm:$0xf] }
  0x21   : > { %v269_v25 = vrot.slane %v267_v17, 5  ;;  %v275_v27 = vshll.u32 %v4352_v16, 16  ;;  %v281_v28 = vshll.u32 %v4355_v18, 16  ;;  %v285_v31 = vshrl.u32 %v4355_v18, 16  ;;  %v4383_v39 = vld [vmem:[%s4327_s11 + $0x1c] sm:$0xf] }
  0x22   : > { %v254_v29 = vor.u32 %v253_v22, %v250_v21  ;;  %v264_v30 = vor.u32 %v263_v24, %v259_v23  ;;  %v291_v32 = vshll.u32 %v4358_v19, 16  ;;  %v274_v35 = vrot.slane %v272_v26, 4  ;;  %v4387_v46 = vld [vmem:[%s4327_s11 + $0x20] sm:$0x1]  ;;  %v4397_v57 = vld [vmem:[%s4327_s11 + $0x24] sm:$0xf] }
  0x23   : > { %v277_v36 = vrot.slane %v275_v27, 5  ;;  %v283_v37 = vrot.slane %v281_v28, 5  ;;  %v4380_v38 = vcombine.low %v4352_v16, %v4355_v18  ;;  %v287_v42 = vrot.slane %v285_v31, 4  ;;  %v4402_v62 = vld [vmem:[%s4327_s11 + $0x28] sm:$0xf]  ;;  %s5352_s15 = scalar_lea.sflag [#allocation3], %s175_s7 }
  0x24   : > { %v255_v40 = vrot.slane %v254_v29, 4  ;;  %v265_v41 = vrot.slane %v264_v30, 4  ;;  %v293_v43 = vrot.slane %v291_v32, 5  ;;  %v1218_v45 = vrot.slane %v4358_v19, 5  ;;  %v4410_v4 = vld [vmem:[%s4327_s11 + $0x2c] sm:$0x1] }
  0x25   : > { %v278_v44 = vor.u32 %v277_v36, %v274_v35  ;;  %v296_v47 = vshrl.u32 %v4370_v33, 16  ;;  %v299_v48 = vshll.u32 %v4370_v33, 16  ;;  %v288_v51 = vor.u32 %v287_v42, %v283_v37  ;;  %v4416_v14 = vld [vmem:[%s4327_s11 + $0x30] sm:$0xf]  ;;  %v4428_v28 = vld [vmem:[%s4327_s11 + $0x34] sm:$0xf] }
  0x26   : > { %v260_v49 = vsel %vm4374_vm4, %v255_v40, %v259_v23  ;;  %v270_v50 = vsel %vm4374_vm4, %v265_v41, %v269_v25  ;;  %v305_v52 = vshll.u32 %v4383_v39, 16  ;;  %v309_v60 = vshrl.u32 %v4383_v39, 16  ;;  %v4423_v23 = vld [vmem:[%s5399_s1 + $0x8] sm:$0xf]  ;;  %v4435_v32 = vld [vmem:[%s4327_s11 + $0x38] sm:$0x1] }
  0x27   : > { %v3106_v53 = vcombine.low %v260_v49, %v270_v50  ;;  %v279_v54 = vrot.slane %v278_v44, 4  ;;  %v298_v55 = vrot.slane %v296_v47, 4  ;;  %v301_v56 = vrot.slane %v299_v48, 5  ;;  %v4443_v48 = vld [vmem:[%s4327_s11 + $0x3c] sm:$0xf]  ;;  %s4223_s28 = smov [#allocation2]  }
  0x28   : > { %v289_v58 = vrot.slane %v288_v51, 4  ;;  %v307_v59 = vrot.slane %v305_v52, 5  ;;  %v315_v61 = vshll.u32 %v4387_v46, 16  ;;  %v1222_v1 = vrot.slane %v4383_v39, 5  ;;  %v4451_v52 = vld [vmem:[%s4327_s11 + $0x40] sm:$0xf] }
  0x29   : > { %3491 = vmatprep.mubr.msk.bf16.mxu1 %vm681_vm3, %v3106_v53  ;;  %v284_v63 = vsel %vm4374_vm4, %v279_v54, %v283_v37  ;;  %v302_v0 = vor.u32 %v301_v56, %v298_v55  ;;  %v1225_v2 = vrot.slane %v4387_v46, 5  ;;  %v311_v11 = vrot.slane %v309_v60, 4  ;;  %s4147_s29 = sshll.u32 %s4223_s28, 4  ;;  %s4148_s29 = int_to_ptr.vmem [resolvable:$false] %s4147_s29 }
  0x2a   : > { %v294_v5 = vsel %vm4374_vm4, %v289_v58, %v293_v43  ;;  %v317_v12 = vrot.slane %v315_v61, 5  ;;  %v320_v13 = vshrl.u32 %v4397_v57, 16  ;;  %v323_v21 = vshll.u32 %v4397_v57, 16  ;;  %s4149_s30 = scalar_lea.vmem %s4148_s29, 8192 }
  0x2b   : > { %v3107_v15 = vcombine.low %v284_v63, %v294_v5  ;;  %v303_v17 = vrot.slane %v302_v0, 4  ;;  %v329_v22 = vshll.u32 %v4402_v62, 16  ;;  %v312_v24 = vor.u32 %v311_v11, %v307_v59  ;;  %v4463_v5 = vld [vmem:[%s4327_s11 + $0x44] sm:$0x1] }
  0x2c   : > { %v322_v25 = vrot.slane %v320_v13, 4  ;;  %v333_v26 = vshrl.u32 %v4402_v62, 16  ;;  %v339_v27 = vshll.u32 %v4410_v4, 16  ;;  %v325_v30 = vrot.slane %v323_v21, 5  ;;  %v4468_v13 = vld [vmem:[%s4327_s11 + $0x48] sm:$0xf] }
  0x2d   : > { %3627 = vmatprep.mubr.msk.bf16.mxu0 %vm681_vm3, %v3107_v15  ;;  %3492 = vmatmul.mubr.msk.bf16.vlgmr.msra.gmra.mrb[0].mxu1 %vm681_vm3, %v3107_v15  ;;  %v308_v29 = vsel %vm4374_vm4, %v303_v17, %v307_v59  ;;  %v331_v31 = vrot.slane %v329_v22, 5  ;;  %v344_v35 = vshrl.u32 %v4416_v14, 16  ;;  %v313_v36 = vrot.slane %v312_v24, 4  ;;  %v4475_v24 = vld [vmem:[%s4327_s11 + $0x4c] sm:$0xf] }
  0x2e   : > { %3524 = vmatpush3.bf16.msra.mxu1 %v4330_v6  ;;  %v335_v37 = vrot.slane %v333_v26, 4  ;;  %v341_v40 = vrot.slane %v339_v27, 5  ;;  %v347_v41 = vshll.u32 %v4416_v14, 16  ;;  %v326_v42 = vor.u32 %v325_v30, %v322_v25 }
  0x2f   : > { %v346_v43 = vrot.slane %v344_v35, 4  ;;  %v353_v44 = vshll.u32 %v4428_v28, 16  ;;  %v357_v47 = vshrl.u32 %v4428_v28, 16  ;;  %4055 = vmatprep.subr.msk.bf16.mxu1 %vm730_vm0, %v4423_v23  ;;  %v318_v49 = vsel %vm4374_vm4, %v313_v36, %v317_v12 }
  0x30   : > { %v336_v6 = vor.u32 %v335_v37, %v331_v31  ;;  %v349_v50 = vrot.slane %v347_v41, 5  ;;  %v363_v51 = vshll.u32 %v4435_v32, 16  ;;  %v4453_v53 = vcombine.low %v308_v29, %v318_v49 }
  0x31   : > { %v327_v54 = vrot.slane %v326_v42, 4  ;;  %v355_v55 = vrot.slane %v353_v44, 5  ;;  %v359_v56 = vrot.slane %v357_v47, 4  ;;  %v368_v61 = vshrl.u32 %v4443_v48, 16  ;;  %v4497_v42 = vld [vmem:[%s4327_s11 + $0x54] sm:$0xf] }
  0x32   : > { %5438 = vst [vmem:[#allocation6_spill] sm:$0xff] %v4453_v53  ;;  %v337_v58 = vrot.slane %v336_v6, 4  ;;  %v350_v59 = vor.u32 %v349_v50, %v346_v43  ;;  %v365_v60 = vrot.slane %v363_v51, 5  ;;  %3628 = vmatmul.mubr.msk.bf16.vlgmr.msra.gmra.mrb[0].mxu0 %vm681_vm3, %v4453_v53  ;;  %3495 = vmatprep.mubr.msk.bf16.mxu1 %vm681_vm3, %v4453_v53  ;;  %v371_v11 = vshll.u32 %v4443_v48, 16  ;;  %5440 = vst [vmem:[#allocation8_spill] sm:$0xff] %v4497_v42 }
  0x33   : > { %v332_v63 = vsel %vm4374_vm4, %v327_v54, %v331_v31  ;;  %v360_v0 = vor.u32 %v359_v56, %v355_v55  ;;  %v377_v12 = vshll.u32 %v4451_v52, 16  ;;  %3660 = vmatpush3.bf16.msra.mxu0 %v4333_v7  ;;  %v370_v21 = vrot.slane %v368_v61, 4  ;;  %v4502_v6 = vld [vmem:[%s4327_s11 + $0x58] sm:$0xf] }
  0x34   : > { %v342_v15 = vsel %vm4374_vm4, %v337_v58, %v341_v40  ;;  %v351_v17 = vrot.slane %v350_v59, 4  ;;  %v381_v22 = vshrl.u32 %v4451_v52, 16  ;;  %v373_v27 = vrot.slane %v371_v11, 5  ;;  %4060 = vmatprep.subr.msk.bf16.mxu0 %vm730_vm0, %v4338_v8  ;;  %v4492_v8 = vld [vmem:[%s4327_s11 + $0x50] sm:$0x1] }
  0x35   : > { %v4477_v25 = vcombine.low %v332_v63, %v342_v15  ;;  %v361_v26 = vrot.slane %v360_v0, 4  ;;  %v379_v29 = vrot.slane %v377_v12, 5  ;;  %v387_v31 = vshll.u32 %v4463_v5, 16  ;;  %v4515_v11 = vld [vmem:[%s4327_s11 + $0x5c] sm:$0x1] }
  0x36   : > { %v356_v7 = vsel %vm4374_vm4, %v351_v17, %v355_v55  ;;  %v383_v30 = vrot.slane %v381_v22, 4  ;;  %v392_v35 = vshrl.u32 %v4468_v13, 16  ;;  %v374_v37 = vor.u32 %v373_v27, %v370_v21  ;;  %v4519_v15 = vld [vmem:[%s4327_s11 + $0x60] sm:$0xf]  ;;  %v4524_v27 = vld [vmem:[%s4327_s11 + $0x64] sm:$0xf] }
  0x37   : > { %5439 = vst [vmem:[#allocation7_spill] sm:$0xff] %v4477_v25  ;;  %3631 = vmatprep.mubr.msk.bf16.mxu0 %vm681_vm3, %v4477_v25  ;;  %3496 = vmatmul.mubr.msk.bf16.gmra.mrb[4].mxu1 %vm681_vm3, %v4477_v25  ;;  %v366_v36 = vsel %vm4374_vm4, %v361_v26, %v365_v60  ;;  %v395_v40 = vshll.u32 %v4468_v13, 16  ;;  %v401_v41 = vshll.u32 %v4475_v24, 16  ;;  %v389_v47 = vrot.slane %v387_v31, 5  ;;  %v4736_v25 = vld [vmem:[%s4327_s11 + $0xa8] sm:$0xf] }
  0x38   : > { %v4499_v43 = vcombine.low %v356_v7, %v366_v36  ;;  %v384_v44 = vor.u32 %v383_v30, %v379_v29  ;;  %v394_v49 = vrot.slane %v392_v35, 4  ;;  %v375_v50 = vrot.slane %v374_v37, 4 }
  0x39   : > { %v397_v51 = vrot.slane %v395_v40, 5  ;;  %v403_v54 = vrot.slane %v401_v41, 5  ;;  %v405_v55 = vshrl.u32 %v4475_v24, 16  ;;  %v411_v58 = vshll.u32 %v4492_v8, 16 }
  0x3a   : > { %5441 = vst [vmem:[#allocation9_spill] sm:$0xff] %v4499_v43  ;;  %3499 = vmatprep.mubr.msk.bf16.mxu1 %vm681_vm3, %v4499_v43  ;;  %v385_v56 = vrot.slane %v384_v44, 4  ;;  %v416_v59 = vshrl.u32 %v4497_v42, 16  ;;  %v419_v60 = vshll.u32 %v4497_v42, 16  ;;  %3632 = vmatmul.mubr.msk.bf16.gmra.mrb[4].mxu0 %vm681_vm3, %v4499_v43  ;;  %v380_v61 = vsel %vm4374_vm4, %v375_v50, %v379_v29 }
  0x3b   : > { %v398_v63 = vor.u32 %v397_v51, %v394_v49  ;;  %v407_v0 = vrot.slane %v405_v55, 4  ;;  %v425_v12 = vshll.u32 %v4502_v6, 16  ;;  %v413_v21 = vrot.slane %v411_v58, 5 }
  0x3c   : > { %v390_v17 = vsel %vm4374_vm4, %v385_v56, %v389_v47  ;;  %v418_v22 = vrot.slane %v416_v59, 4  ;;  %v421_v26 = vrot.slane %v419_v60, 5  ;;  %v429_v36 = vshrl.u32 %v4502_v6, 16  ;;  %v4538_v47 = vld [vmem:[%s4327_s11 + $0x68] sm:$0x1] }
  0x3d   : > { %v4526_v7 = vcombine.low %v380_v61, %v390_v17  ;;  %v399_v29 = vrot.slane %v398_v63, 4  ;;  %v408_v30 = vor.u32 %v407_v0, %v403_v54  ;;  %v427_v31 = vrot.slane %v425_v12, 5 }
  0x3e   : > { %v422_v35 = vor.u32 %v421_v26, %v418_v22  ;;  %v435_v37 = vshll.u32 %v4515_v11, 16  ;;  %v440_v40 = vshrl.u32 %v4519_v15, 16  ;;  %v443_v49 = vshll.u32 %v4519_v15, 16 }
  0x3f   : > { %5442 = vst [vmem:[#allocation10_spill] sm:$0xff] %v4526_v7  ;;  %3635 = vmatprep.mubr.msk.bf16.mxu0 %vm681_vm3, %v4526_v7  ;;  %3500 = vmatmul.mubr.msk.bf16.gmra.mrb[8].mxu1 %vm681_vm3, %v4526_v7  ;;  %v404_v41 = vsel %vm4374_vm4, %v399_v29, %v403_v54  ;;  %v409_v44 = vrot.slane %v408_v30, 4  ;;  %v449_v50 = vshll.u32 %v4524_v27, 16  ;;  %v431_v55 = vrot.slane %v429_v36, 4  ;;  %v4546_v54 = vld [vmem:[%s4327_s11 + $0x6c] sm:$0xf] }
  0x40   : > { %v423_v51 = vrot.slane %v422_v35, 4  ;;  %v437_v56 = vrot.slane %v435_v37, 5  ;;  %v442_v58 = vrot.slane %v440_v40, 4  ;;  %v445_v60 = vrot.slane %v443_v49, 5  ;;  %v4562_v36 = vld [vmem:[%s4327_s11 + $0x70] sm:$0xf] }
  0x41   : > { %v414_v59 = vsel %vm4374_vm4, %v409_v44, %v413_v21  ;;  %v451_v61 = vrot.slane %v449_v50, 5  ;;  %v453_v63 = vshrl.u32 %v4524_v27, 16  ;;  %v432_v17 = vor.u32 %v431_v55, %v427_v31  ;;  %v4713_v7 = vld [vmem:[%s4327_s11 + $0xa0] sm:$0xf] }
  0x42   : > { %v4548_v0 = vcombine.low %v404_v41, %v414_v59  ;;  %v428_v12 = vsel %vm4374_vm4, %v423_v51, %v427_v31  ;;  %v459_v22 = vshll.u32 %v4538_v47, 16  ;;  %v446_v21 = vor.u32 %v445_v60, %v442_v58  ;;  %v4575_v51 = vld [vmem:[%s4327_s11 + $0x74] sm:$0x1] }
  0x43   : > { %v455_v29 = vrot.slane %v453_v63, 4  ;;  %v3171_v30 = vrot.slane %v4352_v16, 9  ;;  %v1215_v35 = vrot.slane %v4355_v18, 5  ;;  %v433_v31 = vrot.slane %v432_v17, 4 }
  0x44   : > { %5443 = vst [vmem:[#allocation11_spill] sm:$0xff] %v4548_v0  ;;  %3636 = vmatmul.mubr.msk.bf16.gmra.mrb[8].mxu0 %vm681_vm3, %v4548_v0  ;;  %3503 = vmatprep.mubr.msk.bf16.mxu1 %vm681_vm3, %v4548_v0  ;;  %v461_v37 = vrot.slane %v459_v22, 5  ;;  %v464_v40 = vshrl.u32 %v4546_v54, 16  ;;  %v467_v41 = vshll.u32 %v4546_v54, 16  ;;  %v447_v44 = vrot.slane %v446_v21, 4 }
  0x45   : > { %v456_v49 = vor.u32 %v455_v29, %v451_v61  ;;  %v1216_v16 = vsel %vm4555_vm7, %v3171_v30, %v1215_v35  ;;  %v1217_v18 = vrot.slane %v1215_v35, 4  ;;  %v438_v50 = vsel %vm4374_vm4, %v433_v31, %v437_v56  ;;  %v4587_v56 = vld [vmem:[%s4327_s11 + $0x78] sm:$0xf]  ;;  %v4603_v31 = vld [vmem:[%s4327_s11 + $0x7c] sm:$0xf] }
  0x46   : > { %v466_v55 = vrot.slane %v464_v40, 4  ;;  %v469_v58 = vrot.slane %v467_v41, 5  ;;  %v473_v59 = vshll.u32 %v4562_v36, 16  ;;  %v4578_v60 = vcombine.low %v428_v12, %v438_v50 }
  0x47   : > { %v452_v63 = vsel %vm4374_vm4, %v447_v44, %v451_v61  ;;  %v457_v17 = vrot.slane %v456_v49, 4  ;;  %v1219_v22 = vsel %vm4555_vm7, %v1217_v18, %v1218_v45  ;;  %v477_v35 = vshrl.u32 %v4562_v36, 16  ;;  %v4608_v49 = vld [vmem:[%s4327_s11 + $0x80] sm:$0x1] }
  0x48   : > { %5446 = vst [vmem:[#allocation12_spill] sm:$0xff] %v4578_v60  ;;  %v4589_v21 = vcombine.low %v1216_v16, %v1219_v22  ;;  %v470_v29 = vor.u32 %v469_v58, %v466_v55  ;;  %v475_v30 = vrot.slane %v473_v59, 5  ;;  %3639 = vmatprep.mubr.msk.bf16.mxu0 %vm681_vm3, %v4578_v60  ;;  %3504 = vmatmul.mubr.msk.bf16.gmra.mrb[12].mxu1 %vm681_vm3, %v4578_v60  ;;  %v483_v45 = vshll.u32 %v4575_v51, 16  ;;  %v4706_v60 = vld [vmem:[%s4327_s11 + $0x9c] sm:$0xf] }
  0x49   : > { %v462_v19 = vsel %vm4374_vm4, %v457_v17, %v461_v37  ;;  %v3172_v61 = vrot.slane %v4370_v33, 9  ;;  %v1224_v12 = vrot.slane %v1222_v1, 4  ;;  %v479_v44 = vrot.slane %v477_v35, 4 }
  0x4a   : > { %5447 = vst [vmem:[#allocation13_spill] sm:$0xff] %v4589_v21  ;;  %v4605_v40 = vcombine.low %v452_v63, %v462_v19  ;;  %v471_v41 = vrot.slane %v470_v29, 4  ;;  %v488_v16 = vshrl.u32 %v4587_v56, 16  ;;  %v485_v18 = vrot.slane %v483_v45, 5  ;;  %v4634_v29 = vld [vmem:[%s4327_s11 + $0x84] sm:$0xf] }
  0x4b   : > { %v1223_v37 = vsel %vm4555_vm7, %v3172_v61, %v1222_v1  ;;  %v1226_v50 = vsel %vm4555_vm7, %v1224_v12, %v1225_v2  ;;  %v491_v55 = vshll.u32 %v4587_v56, 16  ;;  %v480_v59 = vor.u32 %v479_v44, %v475_v30 }
  0x4c   : > { %5448 = vst [vmem:[#allocation14_spill] sm:$0xff] %v4605_v40  ;;  %3640 = vmatmul.mubr.msk.bf16.gmra.mrb[12].mxu0 %vm681_vm3, %v4605_v40  ;;  %3507 = vmatprep.mubr.msk.bf16.mxu1 %vm681_vm3, %v4605_v40  ;;  %v476_v58 = vsel %vm4374_vm4, %v471_v41, %v475_v30  ;;  %v4626_v63 = vcombine.low %v1223_v37, %v1226_v50  ;;  %v490_v1 = vrot.slane %v488_v16, 4  ;;  %v497_v2 = vshll.u32 %v4603_v31, 16  ;;  %v4640_v16 = vld [vmem:[%s4327_s11 + $0x88] sm:$0xf] }
  0x4d   : > { %3661 = vmatprep.mubr.msk.bf16.mxu0 %vm681_vm3, %v4589_v21  ;;  %v493_v46 = vrot.slane %v491_v55, 5  ;;  %v501_v17 = vshrl.u32 %v4603_v31, 16  ;;  %v507_v22 = vshll.u32 %v4608_v49, 16  ;;  %v481_v35 = vrot.slane %v480_v59, 4 }
  0x4e   : > { %5449 = vst [vmem:[#allocation15_spill] sm:$0xff] %v4626_v63  ;;  %v3173_v30 = vrot.slane %v4397_v57, 9  ;;  %v1229_v19 = vrot.slane %v4402_v62, 5  ;;  %v1232_v45 = vrot.slane %v4410_v4, 5  ;;  %v499_v12 = vrot.slane %v497_v2, 5 }
  0x4f   : > { %v494_v61 = vor.u32 %v493_v46, %v490_v1  ;;  %v503_v41 = vrot.slane %v501_v17, 4  ;;  %v509_v44 = vrot.slane %v507_v22, 5  ;;  %v486_v37 = vsel %vm4374_vm4, %v481_v35, %v485_v18  ;;  %v4650_v1 = vld [vmem:[%s4327_s11 + $0x8c] sm:$0x1] }
  0x50   : > { %v1230_v50 = vsel %vm4555_vm7, %v3173_v30, %v1229_v19  ;;  %v1231_v55 = vrot.slane %v1229_v19, 4  ;;  %v512_v59 = vshrl.u32 %v4634_v29, 16  ;;  %v4647_v3 = vcombine.low %v476_v58, %v486_v37 }
  0x51   : > { %v495_v40 = vrot.slane %v494_v61, 4  ;;  %v504_v4 = vor.u32 %v503_v41, %v499_v12  ;;  %v515_v46 = vshll.u32 %v4634_v29, 16  ;;  %v521_v18 = vshll.u32 %v4640_v16, 16  ;;  %v4664_v61 = vld [vmem:[%s4327_s11 + $0x90] sm:$0xf] }
  0x52   : > { %5450 = vst [vmem:[#allocation16_spill] sm:$0xff] %v4647_v3  ;;  %v1233_v2 = vsel %vm4555_vm7, %v1231_v55, %v1232_v45  ;;  %v514_v17 = vrot.slane %v512_v59, 4  ;;  %v525_v22 = vshrl.u32 %v4640_v16, 16  ;;  %3508 = vmatmul.mubr.msk.bf16.gmra.mrb[16].mxu1 %vm681_vm3, %v4647_v3  ;;  %v4669_v45 = vld [vmem:[%s5399_s1 + $0x1c] sm:$0xf]  ;;  %v1236_v59 = vrot.slane %v4428_v28, 5 }
  0x53   : > { %v500_v58 = vsel %vm4374_vm4, %v495_v40, %v499_v12  ;;  %v505_v35 = vrot.slane %v504_v4, 4  ;;  %v4661_v30 = vcombine.low %v1230_v50, %v1233_v2  ;;  %v517_v19 = vrot.slane %v515_v46, 5  ;;  %5452 = vst [vmem:[#allocation18_spill] sm:$0xff] %v4669_v45  ;;  %v4683_v46 = vld [vmem:[%s4327_s11 + $0x94] sm:$0xf] }
  0x54   : > { %3662 = vmatmul.mubr.msk.bf16.vlgmr.msra.gmra.mrb[0].mxu0 %vm681_vm3, %v4626_v63  ;;  %v523_v41 = vrot.slane %v521_v18, 5  ;;  %v527_v37 = vrot.slane %v525_v22, 4  ;;  %v531_v40 = vshll.u32 %v4650_v1, 16  ;;  %v3174_v12 = vrot.slane %v4416_v14, 9  ;;  %v4688_v3 = vld [vmem:[%s4327_s11 + $0x98] sm:$0x1] }
  0x55   : > { %5451 = vst [vmem:[#allocation17_spill] sm:$0xff] %v4661_v30  ;;  %3694 = vmatpush3.bf16.msra.mxu0 %v4362_v20  ;;  %v510_v50 = vsel %vm4374_vm4, %v505_v35, %v509_v44  ;;  %3665 = vmatprep.mubr.msk.bf16.mxu0 %vm681_vm3, %v4661_v30  ;;  %v518_v55 = vor.u32 %v517_v19, %v514_v17  ;;  %v1239_v4 = vrot.slane %v4435_v32, 5  ;;  %v536_v20 = vshrl.u32 %v4664_v61, 16 }
  0x56   : > { %v4685_v2 = vcombine.low %v500_v58, %v510_v50  ;;  %v528_v18 = vor.u32 %v527_v37, %v523_v41  ;;  %v533_v22 = vrot.slane %v531_v40, 5  ;;  %4061 = vmatprep.subr.msk.bf16.mxu0 %vm730_vm0, %v4669_v45  ;;  %v1237_v17 = vsel %vm4555_vm7, %v3174_v12, %v1236_v59 }
  0x57   : > { %v519_v44 = vrot.slane %v518_v55, 4  ;;  %v1238_v35 = vrot.slane %v1236_v59, 4  ;;  %v539_v32 = vshll.u32 %v4664_v61, 16  ;;  %v538_v19 = vrot.slane %v536_v20, 4 }
  0x58   : > { %5453 = vst [vmem:[#allocation19_spill] sm:$0xff] %v4685_v2  ;;  %3511 = vmatprep.mubr.msk.bf16.mxu1 %vm681_vm3, %v4685_v2  ;;  %v529_v58 = vrot.slane %v528_v18, 4  ;;  %v545_v37 = vshll.u32 %v4683_v46, 16  ;;  %v549_v40 = vshrl.u32 %v4683_v46, 16  ;;  %v555_v59 = vshll.u32 %v4688_v3, 16 }
  0x59   : > { %v524_v50 = vsel %vm4374_vm4, %v519_v44, %v523_v41  ;;  %v1240_v55 = vsel %vm4555_vm7, %v1238_v35, %v1239_v4  ;;  %v541_v12 = vrot.slane %v539_v32, 5  ;;  %v3175_v4 = vrot.slane %v4443_v48, 9 }
  0x5a   : > { %v534_v2 = vsel %vm4374_vm4, %v529_v58, %v533_v22  ;;  %v4710_v18 = vcombine.low %v1237_v17, %v1240_v55  ;;  %v547_v20 = vrot.slane %v545_v37, 5  ;;  %v551_v0 = vrot.slane %v549_v40, 4  ;;  %v4726_v58 = vld [vmem:[%s4327_s11 + $0xa4] sm:$0x1] }
  0x5b   : > { %v4715_v43 = vcombine.low %v524_v50, %v534_v2  ;;  %v542_v41 = vor.u32 %v541_v12, %v538_v19  ;;  %v557_v44 = vrot.slane %v555_v59, 5  ;;  %v1243_v32 = vrot.slane %v4451_v52, 5 }
  0x5c   : > { %5454 = vst [vmem:[#allocation20_spill] sm:$0xff] %v4710_v18  ;;  %3666 = vmatmul.mubr.msk.bf16.gmra.mrb[4].mxu0 %vm681_vm3, %v4710_v18  ;;  %v552_v35 = vor.u32 %v551_v0, %v547_v20  ;;  %v1246_v22 = vrot.slane %v4463_v5, 5  ;;  %v560_v17 = vshrl.u32 %v4706_v60, 16  ;;  %v563_v19 = vshll.u32 %v4706_v60, 16 }
  0x5d   : > { %5455 = vst [vmem:[#allocation21_spill] sm:$0xff] %v4715_v43  ;;  %3512 = vmatmul.mubr.msk.bf16.gmra.mrb[20].mxu1 %vm681_vm3, %v4715_v43  ;;  %v543_v2 = vrot.slane %v542_v41, 4  ;;  %v569_v37 = vshll.u32 %v4713_v7, 16  ;;  %v573_v0 = vshrl.u32 %v4713_v7, 16  ;;  %v1244_v5 = vsel %vm4555_vm7, %v3175_v4, %v1243_v32 }
  0x5e   : > { %v553_v40 = vrot.slane %v552_v35, 4  ;;  %v1245_v50 = vrot.slane %v1243_v32, 4  ;;  %v562_v55 = vrot.slane %v560_v17, 4  ;;  %v565_v59 = vrot.slane %v563_v19, 5  ;;  %v4745_v32 = vld [vmem:[%s4327_s11 + $0xac] sm:$0xf] }
  0x5f   : > { %v548_v12 = vsel %vm4374_vm4, %v543_v2, %v547_v20  ;;  %v571_v41 = vrot.slane %v569_v37, 5  ;;  %v575_v43 = vrot.slane %v573_v0, 4  ;;  %v579_v35 = vshll.u32 %v4726_v58, 16 }
  0x60   : > { %v558_v53 = vsel %vm4374_vm4, %v553_v40, %v557_v44  ;;  %v1247_v18 = vsel %vm4555_vm7, %v1245_v50, %v1246_v22  ;;  %v3176_v4 = vrot.slane %v4468_v13, 9  ;;  %v566_v2 = vor.u32 %v565_v59, %v562_v55 }
  0x61   : > { %v4747_v17 = vcombine.low %v548_v12, %v558_v53  ;;  %v4749_v20 = vcombine.low %v1244_v5, %v1247_v18  ;;  %v576_v19 = vor.u32 %v575_v43, %v571_v41  ;;  %v581_v37 = vrot.slane %v579_v35, 5  ;;  %v4759_v18 = vld [vmem:[%s4327_s11 + $0xb0] sm:$0x1] }
  0x62   : > { %v1250_v0 = vrot.slane %v4475_v24, 5  ;;  %v1253_v44 = vrot.slane %v4492_v8, 5  ;;  %v584_v22 = vshrl.u32 %v4736_v25, 16  ;;  %v567_v53 = vrot.slane %v566_v2, 4 }
  0x63   : > { %5456 = vst [vmem:[#allocation22_spill] sm:$0xff] %v4747_v17  ;;  %5457 = vst [vmem:[#allocation23_spill] sm:$0xff] %v4749_v20  ;;  %3515 = vmatprep.mubr.msk.bf16.mxu1 %vm681_vm3, %v4747_v17  ;;  %3669 = vmatprep.mubr.msk.bf16.mxu0 %vm681_vm3, %v4749_v20  ;;  %v577_v40 = vrot.slane %v576_v19, 4  ;;  %v587_v43 = vshll.u32 %v4736_v25, 16  ;;  %v593_v5 = vshll.u32 %v4745_v32, 16  ;;  %v597_v12 = vshrl.u32 %v4745_v32, 16 }
  0x64   : > { %v1251_v8 = vsel %vm4555_vm7, %v3176_v4, %v1250_v0  ;;  %v1252_v50 = vrot.slane %v1250_v0, 4  ;;  %v586_v55 = vrot.slane %v584_v22, 4  ;;  %v572_v59 = vsel %vm4374_vm4, %v567_v53, %v571_v41  ;;  %v4771_v17 = vld [vmem:[%s4327_s11 + $0xb4] sm:$0xf]  ;;  %v4783_v53 = vld [vmem:[%s4327_s11 + $0xb8] sm:$0xf] }
  0x65   : > { %v582_v35 = vsel %vm4374_vm4, %v577_v40, %v581_v37  ;;  %v589_v2 = vrot.slane %v587_v43, 5  ;;  %v595_v19 = vrot.slane %v593_v5, 5  ;;  %v599_v0 = vrot.slane %v597_v12, 4 }
  0x66   : > { %v4773_v20 = vcombine.low %v572_v59, %v582_v35  ;;  %v1254_v4 = vsel %vm4555_vm7, %v1252_v50, %v1253_v44  ;;  %v603_v22 = vshll.u32 %v4759_v18, 16  ;;  %v3177_v41 = vrot.slane %v4497_v42, 9  ;;  %v4789_v44 = vld [vmem:[%s4327_s11 + $0xbc] sm:$0x1] }
  0x67   : > { %v4778_v30 = vcombine.low %v1251_v8, %v1254_v4  ;;  %v590_v63 = vor.u32 %v589_v2, %v586_v55  ;;  %v1257_v37 = vrot.slane %v4502_v6, 5  ;;  %v600_v40 = vor.u32 %v599_v0, %v595_v19 }
  0x68   : > { %5458 = vst [vmem:[#allocation24_spill] sm:$0xff] %v4773_v20  ;;  %3516 = vmatmul.mubr.msk.bf16.gmra.mrb[24].mxu1 %vm681_vm3, %v4773_v20  ;;  %v605_v43 = vrot.slane %v603_v22, 5  ;;  %v1260_v5 = vrot.slane %v4515_v11, 5  ;;  %v608_v50 = vshrl.u32 %v4771_v17, 16  ;;  %v611_v59 = vshll.u32 %v4771_v17, 16 }
  0x69   : > { %5459 = vst [vmem:[#allocation25_spill] sm:$0xff] %v4778_v30  ;;  %3670 = vmatmul.mubr.msk.bf16.gmra.mrb[8].mxu0 %vm681_vm3, %v4778_v30  ;;  %v591_v8 = vrot.slane %v590_v63, 4  ;;  %v1258_v55 = vsel %vm4555_vm7, %v3177_v41, %v1257_v37  ;;  %v1259_v12 = vrot.slane %v1257_v37, 4  ;;  %v601_v35 = vrot.slane %v600_v40, 4 }
  0x6a   : > { %v610_v2 = vrot.slane %v608_v50, 4  ;;  %v617_v4 = vshll.u32 %v4783_v53, 16  ;;  %v621_v11 = vshrl.u32 %v4783_v53, 16  ;;  %v613_v20 = vrot.slane %v611_v59, 5 }
  0x6b   : > { %v596_v0 = vsel %vm4374_vm4, %v591_v8, %v595_v19  ;;  %v1261_v22 = vsel %vm4555_vm7, %v1259_v12, %v1260_v5  ;;  %v627_v63 = vshll.u32 %v4789_v44, 16  ;;  %v606_v41 = vsel %vm4374_vm4, %v601_v35, %v605_v43 }
  0x6c   : > { %v4806_v37 = vcombine.low %v1258_v55, %v1261_v22  ;;  %v619_v40 = vrot.slane %v617_v4, 5  ;;  %v623_v50 = vrot.slane %v621_v11, 4  ;;  %v4808_v30 = vcombine.low %v596_v0, %v606_v41 }
  0x6d   : > { %v614_v21 = vor.u32 %v613_v20, %v610_v2  ;;  %v629_v45 = vrot.slane %v627_v63, 5  ;;  %v3178_v42 = vrot.slane %v4519_v15, 9  ;;  %v1264_v5 = vrot.slane %v4524_v27, 5 }
  0x6e   : > { %3673 = vmatprep.mubr.msk.bf16.mxu0 %vm681_vm3, %v4806_v37  ;;  %v624_v19 = vor.u32 %v623_v50, %v619_v40  ;;  %v1267_v8 = vrot.slane %v4538_v47, 5  ;;  %v3179_v43 = vrot.slane %v4546_v54, 9  ;;  %3519 = vmatprep.mubr.msk.bf16.mxu1 %vm681_vm3, %v4808_v30  ;;  %v3138_v20 = vcombine.low %v4341_v9, %v4344_v10 }
  0x6f   : > { %v615_v55 = vrot.slane %v614_v21, 4  ;;  %v1271_v12 = vrot.slane %v4562_v36, 5  ;;  %v1274_v59 = vrot.slane %v4575_v51, 5  ;;  %v1265_v2 = vsel %vm4555_vm7, %v3178_v42, %v1264_v5 }
  0x70   : > { %v625_v35 = vrot.slane %v624_v19, 4  ;;  %v1266_v4 = vrot.slane %v1264_v5, 4  ;;  %v1278_v47 = vrot.slane %v4603_v31, 5  ;;  %v3180_v9 = vrot.slane %v4587_v56, 9 }
  0x71   : > { %v620_v11 = vsel %vm4374_vm4, %v615_v55, %v619_v40  ;;  %v1272_v21 = vsel %vm4555_vm7, %v3179_v43, %v1271_v12  ;;  %v1273_v0 = vrot.slane %v1271_v12, 4  ;;  %v1281_v42 = vrot.slane %v4608_v49, 5 }
  0x72   : > { %v630_v10 = vsel %vm4374_vm4, %v625_v35, %v629_v45  ;;  %v1268_v51 = vsel %vm4555_vm7, %v1266_v4, %v1267_v8  ;;  %v1280_v22 = vrot.slane %v1278_v47, 4  ;;  %v3181_v19 = vrot.slane %v4634_v29, 9 }
  0x73   : > { %v4835_v63 = vcombine.low %v620_v11, %v630_v10  ;;  %v4837_v41 = vcombine.low %v1265_v2, %v1268_v51  ;;  %v1275_v40 = vsel %vm4555_vm7, %v1273_v0, %v1274_v59  ;;  %v1285_v5 = vrot.slane %v4640_v16, 5 }
  0x74   : > { %v4841_v50 = vcombine.low %v1272_v21, %v1275_v40  ;;  %v1288_v49 = vrot.slane %v4650_v1, 5  ;;  %v1279_v45 = vsel %vm4555_vm7, %v3180_v9, %v1278_v47  ;;  %v1282_v8 = vsel %vm4555_vm7, %v1280_v22, %v1281_v42 }
  0x75   : > { %3520 = vmatmul.mubr.msk.bf16.gmra.mrb[28].mxu1 %vm681_vm3, %v4835_v63  ;;  %3674 = vmatmul.mubr.msk.bf16.gmra.mrb[12].mxu0 %vm681_vm3, %v4837_v41  ;;  %v1287_v43 = vrot.slane %v1285_v5, 4  ;;  %v1292_v55 = vrot.slane %v4683_v46, 5  ;;  %v1299_v12 = vrot.slane %v4713_v7, 5  ;;  %v1286_v59 = vsel %vm4555_vm7, %v3181_v19, %v1285_v5 }
  0x76   : > { %3525 = vmatprep.mubr.msk.bf16.mxu1 %vm681_vm3, %v3138_v20  ;;  %3677 = vmatprep.mubr.msk.bf16.mxu0 %vm681_vm3, %v4841_v50  ;;  %v4863_v20 = vcombine.low %v1279_v45, %v1282_v8  ;;  %v3182_v35 = vrot.slane %v4664_v61, 9  ;;  %v1295_v4 = vrot.slane %v4688_v3, 5  ;;  %v4869_v47 = vcombine.low %v4370_v33, %v4383_v39  ;;  %v4881_v3 = vld [vmem:[%s5399_s1 + $0xc] sm:$0xf] }
  0x77   : > { %v1289_v1 = vsel %vm4555_vm7, %v1287_v43, %v1288_v49  ;;  %v1294_v2 = vrot.slane %v1292_v55, 4  ;;  %v3183_v11 = vrot.slane %v4706_v60, 9  ;;  %v1417_v21 = vsel %vm730_vm0, %v4423_v23, 0 }
  0x78   : > { %v4874_v0 = vcombine.low %v1286_v59, %v1289_v1  ;;  %v1301_v9 = vrot.slane %v1299_v12, 4  ;;  %v1302_v10 = vrot.slane %v4726_v58, 5  ;;  %v1306_v51 = vrot.slane %v4745_v32, 5 }
  0x79   : > { %v1293_v33 = vsel %vm4555_vm7, %v3182_v35, %v1292_v55  ;;  %v1296_v39 = vsel %vm4555_vm7, %v1294_v2, %v1295_v4  ;;  %v4895_v23 = vcombine.low %v4397_v57, %v4402_v62  ;;  %v1300_v58 = vsel %vm4555_vm7, %v3183_v11, %v1299_v12 }
  0x7a   : > { %v4901_v22 = vcombine.low %v4519_v15, %v4524_v27  ;;  %v1303_v42 = vsel %vm4555_vm7, %v1301_v9, %v1302_v10  ;;  %v3184_v40 = vrot.slane %v4736_v25, 9  ;;  %v1313_v19 = vrot.slane %v4783_v53, 5 }
  0x7b   : > { %v4911_v57 = vcombine.low %v4546_v54, %v4562_v36  ;;  %v4915_v62 = vcombine.low %v1293_v33, %v1296_v39  ;;  %v1308_v15 = vrot.slane %v1306_v51, 4  ;;  %v1309_v27 = vrot.slane %v4759_v18, 5  ;;  %v239_v18 = vld [vmem:[%s4327_s11 + $0xc8] sm:$0x1] }
  0x7c   : > { %v4920_v5 = vcombine.low %v4587_v56, %v4603_v31  ;;  %v4924_v49 = vcombine.low %v4634_v29, %v4640_v16  ;;  %v4928_v54 = vcombine.low %v4664_v61, %v4683_v46  ;;  %v4932_v36 = vcombine.low %v4706_v60, %v4713_v7  ;;  %v4951_v61 = vld [vmem:[%s4327_s11 + $0xc4] sm:$0xf] }
  0x7d   : > { %3526 = vmatmul.mubr.msk.bf16.vlgmr.msra.gmra.mrb[0].mxu1 %vm681_vm3, %v4380_v38  ;;  %3678 = vmatmul.mubr.msk.bf16.gmra.mrb[16].mxu0 %vm681_vm3, %v4863_v20  ;;  %v4936_v45 = vcombine.low %v4736_v25, %v4745_v32  ;;  %v4940_v56 = vcombine.low %v4416_v14, %v4428_v28  ;;  %v4942_v31 = vcombine.low %v1300_v58, %v1303_v42  ;;  %v3185_v16 = vrot.slane %v4771_v17, 9  ;;  %v5460_v42 = vld [vmem:[#allocation8_spill] sm:$0xff] }
  0x7e   : > { %3558 = vmatpush3.bf16.msra.mxu1 %v1417_v21  ;;  %3529 = vmatprep.mubr.msk.bf16.mxu1 %vm681_vm3, %v4869_v47  ;;  %v4946_v29 = vcombine.low %v4771_v17, %v4783_v53  ;;  %v1315_v7 = vrot.slane %v1313_v19, 4  ;;  %v1316_v60 = vrot.slane %v4789_v44, 5  ;;  %v1307_v14 = vsel %vm4555_vm7, %v3184_v40, %v1306_v51  ;;  %v4971_v17 = vld [vmem:[%s4327_s11 + $0xc0] sm:$0xf] }
  0x7f   : > { %3681 = vmatprep.mubr.msk.bf16.mxu0 %vm681_vm3, %v4874_v0  ;;  %4056 = vmatprep.subr.msk.bf16.mxu1 %vm730_vm0, %v4881_v3  ;;  %v1310_v28 = vsel %vm4555_vm7, %v1308_v15, %v1309_v27  ;;  %v2049_v25 = vrot.slane %v4951_v61, 5  ;;  %v1314_v46 = vsel %vm4555_vm7, %v3185_v16, %v1313_v19  ;;  %v4976_v53 = vcombine.low %v4443_v48, %v4451_v52 }
  0x80   : > { %v1317_v32 = vsel %vm4555_vm7, %v1315_v7, %v1316_v60  ;;  %v4978_v44 = vcombine.low %v1307_v14, %v1310_v28  ;;  %v4982_v8 = vcombine.low %v4468_v13, %v4475_v24  ;;  %v1819_v43 = vshrl.u32 %v4971_v17, 16  ;;  %v3311_v60 = vld [vmem:[%s5399_s1 + $0x20] sm:$0xf]  ;;  %v4139_v14 = vld [vmem:[%s4327_s11 + $0x4] sm:$0xf] }
  0x81   : > { %v1822_v55 = vshll.u32 %v4971_v17, 16  ;;  %v1828_v12 = vshll.u32 %v4951_v61, 16  ;;  %v1832_v59 = vshrl.u32 %v4951_v61, 16  ;;  %v4988_v1 = vcombine.low %v1314_v46, %v1317_v32  ;;  %v4141_v32 = vld [vmem:[%s4327_s11] sm:$0xf] }
  0x82   : > { %v3255_v35 = vrot.slane %v4971_v17, 9  ;;  %v2051_v48 = vrot.slane %v2049_v25, 4  ;;  %v2052_v52 = vrot.slane %v239_v18, 5  ;;  %v1821_v2 = vrot.slane %v1819_v43, 4 }
  0x83   : > { %v1824_v4 = vrot.slane %v1822_v55, 5  ;;  %v1830_v11 = vrot.slane %v1828_v12, 5  ;;  %v1834_v21 = vrot.slane %v1832_v59, 4  ;;  %v1838_v9 = vshll.u32 %v239_v18, 16 }
  0x84   : > { %v2050_v10 = vsel %vm4555_vm7, %v3255_v35, %v2049_v25  ;;  %v2053_v51 = vsel %vm4555_vm7, %v2051_v48, %v2052_v52  ;;  %v5005_v40 = vcombine.low %v5460_v42, %v4502_v6  ;;  %v5461_v6 = vld [vmem:[#allocation18_spill] sm:$0xff]  ;;  %v1208_v28 = vrot.slane %v4139_v14, 5  ;;  %v4140_v25 = vld [vmem:[%s4327_s11 + $0x8] sm:$0x1]  ;;  %v5462_v48 = vld [vmem:[#allocation13_spill] sm:$0xff] }
  0x85   : > { %3530 = vmatmul.mubr.msk.bf16.gmra.mrb[4].mxu1 %vm681_vm3, %v4895_v23  ;;  %3682 = vmatmul.mubr.msk.bf16.gmra.mrb[20].mxu0 %vm681_vm3, %v4915_v62  ;;  %v1825_v13 = vor.u32 %v1824_v4, %v1821_v2  ;;  %v1835_v24 = vor.u32 %v1834_v21, %v1830_v11  ;;  %v1840_v58 = vrot.slane %v1838_v9, 5  ;;  %v5007_v19 = vcombine.low %v2050_v10, %v2053_v51  ;;  %v5463_v52 = vld [vmem:[#allocation15_spill] sm:$0xff]  ;;  %v4142_v2 = vld [vmem:[%s5399_s1 + $0x10] sm:$0xf]  ;;  %v5465_v4 = vld [vmem:[#allocation20_spill] sm:$0xff] }
  0x86   : > { %3533 = vmatprep.mubr.msk.bf16.mxu1 %vm681_vm3, %v4940_v56  ;;  %3685 = vmatprep.mubr.msk.bf16.mxu0 %vm681_vm3, %v4942_v31  ;;  %v2497_v7 = vsel %vm730_vm0, %v5461_v6, 0  ;;  %v1211_v46 = vrot.slane %v4140_v25, 5  ;;  %v3170_v18 = vrot.slane %v4141_v32, 9  ;;  %v1210_v43 = vrot.slane %v1208_v28, 4  ;;  %v5466_v21 = vld [vmem:[#allocation23_spill] sm:$0xff]  ;;  %v5473_v42 = vld [vmem:[#allocation12_spill] sm:$0xff] }
  0x87   : > { %v1826_v33 = vrot.slane %v1825_v13, 4  ;;  %v1836_v39 = vrot.slane %v1835_v24, 4  ;;  %v1623_v35 = vsel %vm730_vm0, %v4881_v3, 0  ;;  %v5464_v3 = vld [vmem:[#allocation17_spill] sm:$0xff]  ;;  %v5102_v24 = vld [vmem:[%s4327_s11 + $0xcc] sm:$0xf] }
  0x88   : > { %v1209_v55 = vsel %vm4555_vm7, %v3170_v18, %v1208_v28  ;;  %v1212_v12 = vsel %vm4555_vm7, %v1210_v43, %v1211_v46  ;;  %v5467_v13 = vld [vmem:[#allocation25_spill] sm:$0xff]  ;;  %v2709_v10 = vsel %vm730_vm0, %v3311_v60, 0  ;;  %v5469_v51 = vld [vmem:[#allocation7_spill] sm:$0xff]  ;;  %v2468_v14 = vshll.u32 %v5102_v24, 16  ;;  %v5479_v46 = vld [vmem:[#allocation22_spill] sm:$0xff] }
  0x89   : > { %v1831_v15 = vsel %vm4374_vm4, %v1826_v33, %v1830_v11  ;;  %v1841_v27 = vsel %vm4374_vm4, %v1836_v39, %v1840_v58  ;;  %v3187_v59 = vcombine.low %v1209_v55, %v1212_v12  ;;  %v5091_v11 = vcombine.low %v4971_v17, %v4951_v61  ;;  %v5105_v9 = vld [vmem:[%s4327_s11 + $0xd0] sm:$0xf]  ;;  %v5468_v17 = vld [vmem:[#allocation6_spill] sm:$0xff]  ;;  %v5472_v58 = vld [vmem:[#allocation11_spill] sm:$0xff] }
  0x8a   : > { %v5013_v16 = vcombine.low %v1831_v15, %v1841_v27  ;;  %v3275_v61 = vcombine.low %v5102_v24, %v5105_v9  ;;  %v5470_v33 = vld [vmem:[#allocation9_spill] sm:$0xff]  ;;  %v5471_v39 = vld [vmem:[#allocation10_spill] sm:$0xff]  ;;  %v5475_v27 = vld [vmem:[#allocation16_spill] sm:$0xff]  ;;  %v2478_v28 = vshrl.u32 %v5105_v9, 16  ;;  %v2470_v32 = vrot.slane %v2468_v14, 5 }
  0x8b   : > { %v5474_v15 = vld [vmem:[#allocation14_spill] sm:$0xff]  ;;  %v5476_v6 = vld [vmem:[#allocation19_spill] sm:$0xff]  ;;  %v5478_v25 = vld [vmem:[#allocation5_spill] sm:$0xff]  ;;  %v2695_v34 = vrot.slane %v5105_v9, 5 }
  0x8c   : > { %v2480_v43 = vrot.slane %v2478_v28, 4  ;;  %v242_v55 = vld [vmem:[%s4327_s11 + $0xd4] sm:$0x1]  ;;  %v5480_v12 = vld [vmem:[#allocation24_spill] sm:$0xff]  ;;  %s5275_s11 = scalar_lea.vmem [#allocation2], %s3103_s10 }
  0x8d   : > { %3534 = vmatmul.mubr.msk.bf16.gmra.mrb[8].mxu1 %vm681_vm3, %v4976_v53  ;;  %3686 = vmatmul.mubr.msk.bf16.gmra.mrb[24].mxu0 %vm681_vm3, %v4978_v44  ;;  %s3023_s19 = sshll.u32 %s5275_s11, 4  ;;  %s5345_s19 = int_to_ptr.vmem [resolvable:$true] %s3023_s19 }
  0x8e   : > { %3537 = vmatprep.mubr.msk.bf16.mxu1 %vm681_vm3, %v4982_v8  ;;  %3689 = vmatprep.mubr.msk.bf16.mxu0 %vm681_vm3, %v4988_v1  ;;  %s4143_s27 = scalar_lea.vmem %s5345_s19, 4096  ;;  %p4150_p1 = scmp.lt.s32.totalorder %s5345_s19, %s4148_s29 }
  0x8f   : > { %p4144_p12 = scmp.ne.s32.totalorder %s5345_s19, %s4143_s27  ;;  %p4151_p2 = scmp.lt.s32.totalorder %s4149_s30, %s4143_s27 }
  0x91   : > { %p4145_p13 = pnand %p4144_p12, %p4286_p4  ;;  %p4152_p3 = por %p4151_p2, %p4150_p1 }
  0x93   : > { %p4146_p0 = pneg %p4145_p13 }
  0x95   : > { %3538 = vmatmul.mubr.msk.bf16.gmra.mrb[12].mxu1 %vm681_vm3, %v5005_v40  ;;  %3690 = vmatmul.mubr.msk.bf16.gmra.mrb[28].mxu0 %vm681_vm3, %v5007_v19  ;;  %p4153_p5 = pnand %p4152_p3, %p4146_p0 }
  0x96   : > { %3541 = vmatprep.mubr.msk.bf16.mxu1 %vm681_vm3, %v4901_v22  ;;  %3695 = vmatprep.mubr.msk.bf16.mxu0 %vm681_vm3, %v4869_v47 }
  0x9d   : > { %3542 = vmatmul.mubr.msk.bf16.gmra.mrb[16].mxu1 %vm681_vm3, %v4911_v57  ;;  %3696 = vmatmul.mubr.msk.bf16.vlgmr.msra.gmra.mrb[0].mxu0 %vm681_vm3, %v4895_v23 }
  0x9e   : > { %3728 = vmatpush3.bf16.msra.mxu0 %v2497_v7  ;;  %3545 = vmatprep.mubr.msk.bf16.mxu1 %vm681_vm3, %v4920_v5  ;;  %v5477_v7 = vld [vmem:[#allocation21_spill] sm:$0xff] }
  0x9f   : > { %3699 = vmatprep.mubr.msk.bf16.mxu0 %vm681_vm3, %v4940_v56  ;;  %4062 = vmatprep.subr.msk.bf16.mxu0 %vm730_vm0, %v3311_v60  ;;  %v2465_v60 = vshrl.u32 %v5102_v24, 16 }
  0xa5   : > { %3546 = vmatmul.mubr.msk.bf16.gmra.mrb[20].mxu1 %vm681_vm3, %v4924_v49  ;;  %3700 = vmatmul.mubr.msk.bf16.gmra.mrb[4].mxu0 %vm681_vm3, %v4976_v53 }
  0xa6   : > { %3549 = vmatprep.mubr.msk.bf16.mxu1 %vm681_vm3, %v4928_v54  ;;  %3703 = vmatprep.mubr.msk.bf16.mxu0 %vm681_vm3, %v4982_v8 }
  0xad   : > { %3550 = vmatmul.mubr.msk.bf16.gmra.mrb[24].mxu1 %vm681_vm3, %v4932_v36  ;;  %3704 = vmatmul.mubr.msk.bf16.gmra.mrb[8].mxu0 %vm681_vm3, %v5005_v40 }
  0xae   : > { %3553 = vmatprep.mubr.msk.bf16.mxu1 %vm681_vm3, %v4936_v45  ;;  %3707 = vmatprep.mubr.msk.bf16.mxu0 %vm681_vm3, %v4901_v22 }
  0xb5   : > { %3554 = vmatmul.mubr.msk.bf16.gmra.mrb[28].mxu1 %vm681_vm3, %v4946_v29  ;;  %3708 = vmatmul.mubr.msk.bf16.gmra.mrb[12].mxu0 %vm681_vm3, %v4911_v57 }
  0xb6   : > { %3559 = vmatprep.mubr.msk.bf16.mxu1 %vm681_vm3, %v3187_v59  ;;  %3711 = vmatprep.mubr.msk.bf16.mxu0 %vm681_vm3, %v4920_v5 }
  0xbd   : > { %3560 = vmatmul.mubr.msk.bf16.vlgmr.msra.gmra.mrb[0].mxu1 %vm681_vm3, %v5462_v48  ;;  %3712 = vmatmul.mubr.msk.bf16.gmra.mrb[16].mxu0 %vm681_vm3, %v4924_v49 }
  0xbe   : > { %3592 = vmatpush3.bf16.msra.mxu1 %v1623_v35  ;;  %3563 = vmatprep.mubr.msk.bf16.mxu1 %vm681_vm3, %v5463_v52  ;;  %v2484_v35 = vshll.u32 %v242_v55, 16 }
  0xbf   : > { %3715 = vmatprep.mubr.msk.bf16.mxu0 %vm681_vm3, %v4928_v54  ;;  %4058 = vmatprep.subr.msk.bf16.mxu1 %vm730_vm0, %v4142_v2 }
  0xc5   : > { %3564 = vmatmul.mubr.msk.bf16.gmra.mrb[4].mxu1 %vm681_vm3, %v5464_v3  ;;  %3716 = vmatmul.mubr.msk.bf16.gmra.mrb[20].mxu0 %vm681_vm3, %v4932_v36 }
  0xc6   : > { %3567 = vmatprep.mubr.msk.bf16.mxu1 %vm681_vm3, %v5465_v4  ;;  %3719 = vmatprep.mubr.msk.bf16.mxu0 %vm681_vm3, %v4936_v45 }
  0xcd   : > { %3568 = vmatmul.mubr.msk.bf16.gmra.mrb[8].mxu1 %vm681_vm3, %v5466_v21  ;;  %3720 = vmatmul.mubr.msk.bf16.gmra.mrb[24].mxu0 %vm681_vm3, %v4946_v29 }
  0xce   : > { %3571 = vmatprep.mubr.msk.bf16.mxu1 %vm681_vm3, %v5467_v13  ;;  %3723 = vmatprep.mubr.msk.bf16.mxu0 %vm681_vm3, %v5091_v11 }
  0xd5   : > { %3572 = vmatmul.mubr.msk.bf16.gmra.mrb[12].mxu1 %vm681_vm3, %v4806_v37  ;;  %3724 = vmatmul.mubr.msk.bf16.gmra.mrb[28].mxu0 %vm681_vm3, %v3275_v61  ;;  %v2486_v61 = vrot.slane %v2484_v35, 5 }
  0xd6   : > { %3575 = vmatprep.mubr.msk.bf16.mxu1 %vm681_vm3, %v4837_v41  ;;  %3729 = vmatprep.mubr.msk.bf16.mxu0 %vm681_vm3, %v5468_v17 }
  0xdd   : > { %3576 = vmatmul.mubr.msk.bf16.gmra.mrb[16].mxu1 %vm681_vm3, %v4841_v50  ;;  %3730 = vmatmul.mubr.msk.bf16.vlgmr.msra.gmra.mrb[0].mxu0 %vm681_vm3, %v5469_v51 }
  0xde   : > { %3762 = vmatpush3.bf16.msra.mxu0 %v2709_v10  ;;  %3579 = vmatprep.mubr.msk.bf16.mxu1 %vm681_vm3, %v4863_v20 }
  0xdf   : > { %3733 = vmatprep.mubr.msk.bf16.mxu0 %vm681_vm3, %v5470_v33 }
  0xe5   : > { %3580 = vmatmul.mubr.msk.bf16.gmra.mrb[20].mxu1 %vm681_vm3, %v4874_v0  ;;  %3734 = vmatmul.mubr.msk.bf16.gmra.mrb[4].mxu0 %vm681_vm3, %v5471_v39 }
  0xe6   : > { %3583 = vmatprep.mubr.msk.bf16.mxu1 %vm681_vm3, %v4915_v62  ;;  %3737 = vmatprep.mubr.msk.bf16.mxu0 %vm681_vm3, %v5472_v58 }
  0xed   : > { %3584 = vmatmul.mubr.msk.bf16.gmra.mrb[24].mxu1 %vm681_vm3, %v4942_v31  ;;  %3738 = vmatmul.mubr.msk.bf16.gmra.mrb[8].mxu0 %vm681_vm3, %v5473_v42 }
  0xee   : > { %3587 = vmatprep.mubr.msk.bf16.mxu1 %vm681_vm3, %v4978_v44  ;;  %3741 = vmatprep.mubr.msk.bf16.mxu0 %vm681_vm3, %v5474_v15 }
  0xf5   : > { %3588 = vmatmul.mubr.msk.bf16.gmra.mrb[28].mxu1 %vm681_vm3, %v4988_v1  ;;  %3742 = vmatmul.mubr.msk.bf16.gmra.mrb[12].mxu0 %vm681_vm3, %v5475_v27 }
  0xf6   : > { %3593 = vmatprep.mubr.msk.bf16.mxu1 %vm681_vm3, %v4380_v38  ;;  %3745 = vmatprep.mubr.msk.bf16.mxu0 %vm681_vm3, %v5476_v6  ;;  %v2474_v38 = vshll.u32 %v5105_v9, 16 }
  0xf8   : > { %v2476_v18 = vrot.slane %v2474_v38, 5 }
  0xfa   : > { %v2481_v59 = vor.u32 %v2480_v43, %v2476_v18 }
  0xfc   : > { %v2482_v2 = vrot.slane %v2481_v59, 4 }
  0xfd   : > { %3594 = vmatmul.mubr.msk.bf16.vlgmr.msra.gmra.mrb[0].mxu1 %vm681_vm3, %v4869_v47  ;;  %3746 = vmatmul.mubr.msk.bf16.gmra.mrb[16].mxu0 %vm681_vm3, %v5477_v7  ;;  %v2467_v47 = vrot.slane %v2465_v60, 4 }
  0xfe   : > { %3796 = vmatpush3.bf16.msra.mxu1 %v5478_v25  ;;  %3597 = vmatprep.mubr.msk.bf16.mxu1 %vm681_vm3, %v4895_v23 }
  0xff   : > { %3749 = vmatprep.mubr.msk.bf16.mxu0 %vm681_vm3, %v5479_v46  ;;  %v2471_v23 = vor.u32 %v2470_v32, %v2467_v47 }
 0x101   : > { %v2472_v48 = vrot.slane %v2471_v23, 4 }
 0x105   : > { %3598 = vmatmul.mubr.msk.bf16.gmra.mrb[4].mxu1 %vm681_vm3, %v4940_v56  ;;  %3750 = vmatmul.mubr.msk.bf16.gmra.mrb[20].mxu0 %vm681_vm3, %v5480_v12  ;;  %v2477_v56 = vsel %vm4374_vm4, %v2472_v48, %v2476_v18 }
 0x106   : > { %3601 = vmatprep.mubr.msk.bf16.mxu1 %vm681_vm3, %v4976_v53  ;;  %3753 = vmatprep.mubr.msk.bf16.mxu0 %vm681_vm3, %v4808_v30  ;;  %v2487_v53 = vsel %vm4374_vm4, %v2482_v2, %v2486_v61 }
 0x107   : > { %v3293_v17 = vcombine.low %v2477_v56, %v2487_v53 }
 0x10d   : > { %3602 = vmatmul.mubr.msk.bf16.gmra.mrb[8].mxu1 %vm681_vm3, %v4982_v8  ;;  %3754 = vmatmul.mubr.msk.bf16.gmra.mrb[24].mxu0 %vm681_vm3, %v4835_v63 }
 0x10e   : > { %3605 = vmatprep.mubr.msk.bf16.mxu1 %vm681_vm3, %v5005_v40  ;;  %3757 = vmatprep.mubr.msk.bf16.mxu0 %vm681_vm3, %v5013_v16 }
 0x115   : > { %3606 = vmatmul.mubr.msk.bf16.gmra.mrb[12].mxu1 %vm681_vm3, %v4901_v22  ;;  %3758 = vmatmul.mubr.msk.bf16.gmra.mrb[28].mxu0 %vm681_vm3, %v3293_v17 }
 0x116   : > { %3609 = vmatprep.mubr.msk.bf16.mxu1 %vm681_vm3, %v4911_v57  ;;  %3763 = vmatprep.mubr.msk.bf16.mxu0 %vm681_vm3, %v5463_v52 }
 0x11d   : > { %3610 = vmatmul.mubr.msk.bf16.gmra.mrb[16].mxu1 %vm681_vm3, %v4920_v5  ;;  %3764 = vmatmul.mubr.msk.bf16.vlgmr.msra.gmra.mrb[0].mxu0 %vm681_vm3, %v5464_v3 }
 0x11e   : > { %3613 = vmatprep.mubr.msk.bf16.mxu1 %vm681_vm3, %v4924_v49  ;;  %3767 = vmatprep.mubr.msk.bf16.mxu0 %vm681_vm3, %v5465_v4 }
 0x125   : > { %3614 = vmatmul.mubr.msk.bf16.gmra.mrb[20].mxu1 %vm681_vm3, %v4928_v54  ;;  %3768 = vmatmul.mubr.msk.bf16.gmra.mrb[4].mxu0 %vm681_vm3, %v5466_v21 }
 0x126   : > { %3617 = vmatprep.mubr.msk.bf16.mxu1 %vm681_vm3, %v4932_v36  ;;  %3771 = vmatprep.mubr.msk.bf16.mxu0 %vm681_vm3, %v5467_v13 }
 0x12d   : > { %3618 = vmatmul.mubr.msk.bf16.gmra.mrb[24].mxu1 %vm681_vm3, %v4936_v45  ;;  %3772 = vmatmul.mubr.msk.bf16.gmra.mrb[8].mxu0 %vm681_vm3, %v4806_v37  ;;  %v3310_v37 = vrot.slane %v5102_v24, 9 }
 0x12e   : > { %3621 = vmatprep.mubr.msk.bf16.mxu1 %vm681_vm3, %v4946_v29  ;;  %3775 = vmatprep.mubr.msk.bf16.mxu0 %vm681_vm3, %v4837_v41  ;;  %v2697_v41 = vrot.slane %v2695_v34, 4 }
 0x135   : > { %3622 = vmatmul.mubr.msk.bf16.gmra.mrb[28].mxu1 %vm681_vm3, %v5091_v11  ;;  %3776 = vmatmul.mubr.msk.bf16.gmra.mrb[12].mxu0 %vm681_vm3, %v4841_v50  ;;  %v2698_v50 = vrot.slane %v242_v55, 5 }
 0x136   : > { %3643 = vmatprep.mubr.msk.bf16.mxu1 %vm681_vm3, %v5475_v27  ;;  %3779 = vmatprep.mubr.msk.bf16.mxu0 %vm681_vm3, %v4863_v20  ;;  %v2696_v20 = vsel %vm4555_vm7, %v3310_v37, %v2695_v34 }
 0x13d   : > { %3644 = vmatmul.mubr.msk.bf16.vlgmr.msra.gmra.mrb[16].mxu1 %vm681_vm3, %v5476_v6  ;;  %3780 = vmatmul.mubr.msk.bf16.gmra.mrb[16].mxu0 %vm681_vm3, %v4874_v0  ;;  %v2699_v0 = vsel %vm4555_vm7, %v2697_v41, %v2698_v50 }
 0x13e   : > { %3647 = vmatprep.mubr.msk.bf16.mxu1 %vm681_vm3, %v5477_v7  ;;  %3783 = vmatprep.mubr.msk.bf16.mxu0 %vm681_vm3, %v4915_v62  ;;  %v3312_v22 = vcombine.low %v2696_v20, %v2699_v0 }
 0x145   : > { %3648 = vmatmul.mubr.msk.bf16.gmra.mrb[20].mxu1 %vm681_vm3, %v5479_v46  ;;  %3784 = vmatmul.mubr.msk.bf16.gmra.mrb[20].mxu0 %vm681_vm3, %v4942_v31 }
 0x146   : > { %3651 = vmatprep.mubr.msk.bf16.mxu1 %vm681_vm3, %v5480_v12  ;;  %3787 = vmatprep.mubr.msk.bf16.mxu0 %vm681_vm3, %v4978_v44 }
 0x14d   : > { %3652 = vmatmul.mubr.msk.bf16.gmra.mrb[24].mxu1 %vm681_vm3, %v4808_v30  ;;  %3788 = vmatmul.mubr.msk.bf16.gmra.mrb[24].mxu0 %vm681_vm3, %v4988_v1 }
 0x14e   : > { %3655 = vmatprep.mubr.msk.bf16.mxu1 %vm681_vm3, %v4835_v63  ;;  %3791 = vmatprep.mubr.msk.bf16.mxu0 %vm681_vm3, %v5007_v19 }
 0x155   : > { %3656 = vmatmul.mubr.msk.bf16.gmra.mrb[28].mxu1 %vm681_vm3, %v5013_v16  ;;  %3792 = vmatmul.mubr.msk.bf16.gmra.mrb[28].mxu0 %vm681_vm3, %v3312_v22  ;;  %v5267_v16 = vld [vmem:[%s5400_s2] ss:$0 sm:$0xff] }
 0x1d0   : > { %v3595_v30 = vpop.f32.mrb[0].mxu1 }
 0x1d1   : > { %v1659_v57 = vpop.f32.mrb[1].mxu1 }
 0x1d2   : > { %v3596_v62 = vpop.f32.mrb[2].mxu1 }
 0x1d3   : > { %v1662_v63 = vpop.f32.mrb[3].mxu1 }
 0x1d8   : > { %v3599_v5 = vpop.f32.mrb[4].mxu1 }
 0x1d9   : > { %v1675_v49 = vpop.f32.mrb[5].mxu1 }
 0x1da   : > { %v3600_v54 = vpop.f32.mrb[6].mxu1 }
 0x1db   : > { %v1678_v36 = vpop.f32.mrb[7].mxu1 }
 0x1e0   : > { %v3603_v45 = vpop.f32.mrb[8].mxu1 }
 0x1e1   : > { %v1691_v31 = vpop.f32.mrb[9].mxu1 }
 0x1e2   : > { %v3604_v26 = vpop.f32.mrb[10].mxu1 }
 0x1e3   : > { %v1694_v29 = vpop.f32.mrb[11].mxu1 }
 0x1e8   : > { %v5255_v44 = vpop.f32.mrb[12].mxu1 }
 0x1e9   : > { %v5257_v8 = vpop.f32.mrb[13].mxu1 }
 0x1ea   : > { %v5259_v1 = vpop.f32.mrb[14].mxu1 }
 0x1eb   : > { %v5261_v40 = vpop.f32.mrb[15].mxu1 }
 0x1f0   : > { %v3765_v19 = vpop.f32.mrb[0].mxu0 }
 0x1f1   : > { %v3797_v52 = vadd.f32 %v3765_v19, %v3595_v30  ;;  %v2745_v3 = vpop.f32.mrb[1].mxu0 }
 0x1f2   : > { %v3798_v4 = vadd.f32 %v2745_v3, %v1659_v57  ;;  %v3766_v11 = vpop.f32.mrb[2].mxu0 }
 0x1f3   : > { %v2913_v21 = vadd.f32 %v3797_v52, %v5267_v16  ;;  %v3799_v13 = vadd.f32 %v3766_v11, %v3596_v62  ;;  %v2748_v24 = vpop.f32.mrb[3].mxu0 }
 0x1f4   : > { %v2911_v9 = vadd.f32 %v3798_v4, %v5267_v16  ;;  %v3800_v10 = vadd.f32 %v2748_v24, %v1662_v63 }
 0x1f5   : > { %v2945_v51 = vmax.f32 %v2913_v21, 0.0  ;;  %v2914_v33 = vadd.f32 %v3799_v13, %v5267_v16 }
 0x1f6   : > { %v2943_v39 = vmax.f32 %v2911_v9, 0.0  ;;  %v2912_v58 = vadd.f32 %v3800_v10, %v5267_v16 }
 0x1f7   : > { %2977 = vst [vmem:[%s5275_s11 + $0x10] sm:$0xff] %v2945_v51  ;;  %v2946_v42 = vmax.f32 %v2914_v33, 0.0 }
 0x1f8   : > { %2975 = vst [vmem:[%s5275_s11] sm:$0xff] %v2943_v39  ;;  %v2944_v15 = vmax.f32 %v2912_v58, 0.0  ;;  %v3769_v27 = vpop.f32.mrb[4].mxu0 }
 0x1f9   : > { %2978 = vst [vmem:[%s5275_s11 + $0x18] sm:$0xff] %v2946_v42  ;;  %v3801_v6 = vadd.f32 %v3769_v27, %v3599_v5  ;;  %v2761_v7 = vpop.f32.mrb[5].mxu0 }
 0x1fa   : > { %2976 = vst [vmem:[%s5275_s11 + $0x8] sm:$0xff] %v2944_v15  ;;  %v3802_v60 = vadd.f32 %v2761_v7, %v1675_v49  ;;  %v3770_v14 = vpop.f32.mrb[6].mxu0 }
 0x1fb   : > { %v2917_v28 = vadd.f32 %v3801_v6, %v5267_v16  ;;  %v3803_v25 = vadd.f32 %v3770_v14, %v3600_v54  ;;  %v2764_v38 = vpop.f32.mrb[7].mxu0 }
 0x1fc   : > { %v2915_v46 = vadd.f32 %v3802_v60, %v5267_v16  ;;  %v3804_v47 = vadd.f32 %v2764_v38, %v1678_v36 }
 0x1fd   : > { %v2949_v32 = vmax.f32 %v2917_v28, 0.0  ;;  %v2918_v18 = vadd.f32 %v3803_v25, %v5267_v16 }
 0x1fe   : > { %v2947_v43 = vmax.f32 %v2915_v46, 0.0  ;;  %v2916_v55 = vadd.f32 %v3804_v47, %v5267_v16 }
 0x1ff   : > { %2981 = vst [vmem:[%s5275_s11 + $0x30] sm:$0xff] %v2949_v32  ;;  %v2950_v12 = vmax.f32 %v2918_v18, 0.0 }
 0x200   : > { %2979 = vst [vmem:[%s5275_s11 + $0x20] sm:$0xff] %v2947_v43  ;;  %v2948_v23 = vmax.f32 %v2916_v55, 0.0  ;;  %v3773_v59 = vpop.f32.mrb[8].mxu0 }
 0x201   : > { %2982 = vst [vmem:[%s5275_s11 + $0x38] sm:$0xff] %v2950_v12  ;;  %v3805_v35 = vadd.f32 %v3773_v59, %v3603_v45  ;;  %v2777_v48 = vpop.f32.mrb[9].mxu0 }
 0x202   : > { %2980 = vst [vmem:[%s5275_s11 + $0x28] sm:$0xff] %v2948_v23  ;;  %v3806_v2 = vadd.f32 %v2777_v48, %v1691_v31  ;;  %v3774_v61 = vpop.f32.mrb[10].mxu0 }
 0x203   : > { %v2921_v56 = vadd.f32 %v3805_v35, %v5267_v16  ;;  %v3807_v53 = vadd.f32 %v3774_v61, %v3604_v26  ;;  %v2780_v17 = vpop.f32.mrb[11].mxu0 }
 0x204   : > { %v2919_v34 = vadd.f32 %v3806_v2, %v5267_v16  ;;  %v3808_v37 = vadd.f32 %v2780_v17, %v1694_v29 }
 0x205   : > { %v2953_v41 = vmax.f32 %v2921_v56, 0.0  ;;  %v2922_v50 = vadd.f32 %v3807_v53, %v5267_v16 }
 0x206   : > { %v2951_v20 = vmax.f32 %v2919_v34, 0.0  ;;  %v2920_v0 = vadd.f32 %v3808_v37, %v5267_v16 }
 0x207   : > { %2985 = vst [vmem:[%s5275_s11 + $0x50] sm:$0xff] %v2953_v41  ;;  %v2954_v22 = vmax.f32 %v2922_v50, 0.0 }
 0x208   : > { %2983 = vst [vmem:[%s5275_s11 + $0x40] sm:$0xff] %v2951_v20  ;;  %v2952_v30 = vmax.f32 %v2920_v0, 0.0  ;;  %v3777_v57 = vpop.f32.mrb[12].mxu0 }
 0x209   : > { %2986 = vst [vmem:[%s5275_s11 + $0x58] sm:$0xff] %v2954_v22  ;;  %v3809_v62 = vadd.f32 %v3777_v57, %v5255_v44  ;;  %v2793_v63 = vpop.f32.mrb[13].mxu0 }
 0x20a   : > { %2984 = vst [vmem:[%s5275_s11 + $0x48] sm:$0xff] %v2952_v30  ;;  %v3810_v5 = vadd.f32 %v2793_v63, %v5257_v8  ;;  %v3778_v49 = vpop.f32.mrb[14].mxu0 }
 0x20b   : > { %v2925_v54 = vadd.f32 %v3809_v62, %v5267_v16  ;;  %v3811_v36 = vadd.f32 %v3778_v49, %v5259_v1  ;;  %v2796_v45 = vpop.f32.mrb[15].mxu0 }
 0x20c   : > { %v2923_v31 = vadd.f32 %v3810_v5, %v5267_v16  ;;  %v3812_v26 = vadd.f32 %v2796_v45, %v5261_v40 }
 0x20d   : > { %v2957_v29 = vmax.f32 %v2925_v54, 0.0  ;;  %v2926_v44 = vadd.f32 %v3811_v36, %v5267_v16 }
 0x20e   : > { %v2955_v19 = vmax.f32 %v2923_v31, 0.0  ;;  %v2924_v52 = vadd.f32 %v3812_v26, %v5267_v16 }
 0x20f   : > { %2989 = vst [vmem:[%s5275_s11 + $0x70] sm:$0xff] %v2957_v29  ;;  %v2958_v8 = vmax.f32 %v2926_v44, 0.0 }
 0x210   : > { %2987 = vst [vmem:[%s5275_s11 + $0x60] sm:$0xff] %v2955_v19  ;;  %v2956_v3 = vmax.f32 %v2924_v52, 0.0  ;;  %v3645_v4 = vpop.f32.mrb[16].mxu1  ;;  %v3781_v11 = vpop.f32.mrb[16].mxu0 }
 0x211   : > { %2990 = vst [vmem:[%s5275_s11 + $0x78] sm:$0xff] %v2958_v8  ;;  %v3813_v1 = vadd.f32 %v3781_v11, %v3645_v4  ;;  %v1951_v21 = vpop.f32.mrb[17].mxu1  ;;  %v2809_v13 = vpop.f32.mrb[17].mxu0 }
 0x212   : > { %2988 = vst [vmem:[%s5275_s11 + $0x68] sm:$0xff] %v2956_v3  ;;  %v3814_v40 = vadd.f32 %v2809_v13, %v1951_v21  ;;  %v3646_v24 = vpop.f32.mrb[18].mxu1  ;;  %v3782_v9 = vpop.f32.mrb[18].mxu0 }
 0x213   : > { %v2929_v10 = vadd.f32 %v3813_v1, %v5267_v16  ;;  %v3815_v51 = vadd.f32 %v3782_v9, %v3646_v24  ;;  %v1954_v33 = vpop.f32.mrb[19].mxu1  ;;  %v2812_v39 = vpop.f32.mrb[19].mxu0 }
 0x214   : > { %v2927_v58 = vadd.f32 %v3814_v40, %v5267_v16  ;;  %v3816_v42 = vadd.f32 %v2812_v39, %v1954_v33 }
 0x215   : > { %v2961_v15 = vmax.f32 %v2929_v10, 0.0  ;;  %v2930_v27 = vadd.f32 %v3815_v51, %v5267_v16 }
 0x216   : > { %v2959_v6 = vmax.f32 %v2927_v58, 0.0  ;;  %v2928_v7 = vadd.f32 %v3816_v42, %v5267_v16 }
 0x217   : > { %2993 = vst [vmem:[%s5275_s11 + $0x90] sm:$0xff] %v2961_v15  ;;  %v2962_v60 = vmax.f32 %v2930_v27, 0.0 }
 0x218   : > { %2991 = vst [vmem:[%s5275_s11 + $0x80] sm:$0xff] %v2959_v6  ;;  %v2960_v14 = vmax.f32 %v2928_v7, 0.0  ;;  %v3649_v28 = vpop.f32.mrb[20].mxu1  ;;  %v3785_v25 = vpop.f32.mrb[20].mxu0 }
 0x219   : > { %2994 = vst [vmem:[%s5275_s11 + $0x98] sm:$0xff] %v2962_v60  ;;  %v3817_v38 = vadd.f32 %v3785_v25, %v3649_v28  ;;  %v1967_v46 = vpop.f32.mrb[21].mxu1  ;;  %v2825_v47 = vpop.f32.mrb[21].mxu0 }
 0x21a   : > { %2992 = vst [vmem:[%s5275_s11 + $0x88] sm:$0xff] %v2960_v14  ;;  %v3818_v32 = vadd.f32 %v2825_v47, %v1967_v46  ;;  %v3650_v18 = vpop.f32.mrb[22].mxu1  ;;  %v3786_v43 = vpop.f32.mrb[22].mxu0 }
 0x21b   : > { %v2933_v55 = vadd.f32 %v3817_v38, %v5267_v16  ;;  %v3819_v12 = vadd.f32 %v3786_v43, %v3650_v18  ;;  %v1970_v23 = vpop.f32.mrb[23].mxu1  ;;  %v2828_v59 = vpop.f32.mrb[23].mxu0 }
 0x21c   : > { %v2931_v35 = vadd.f32 %v3818_v32, %v5267_v16  ;;  %v3820_v48 = vadd.f32 %v2828_v59, %v1970_v23 }
 0x21d   : > { %v2965_v2 = vmax.f32 %v2933_v55, 0.0  ;;  %v2934_v61 = vadd.f32 %v3819_v12, %v5267_v16 }
 0x21e   : > { %v2963_v56 = vmax.f32 %v2931_v35, 0.0  ;;  %v2932_v53 = vadd.f32 %v3820_v48, %v5267_v16 }
 0x21f   : > { %2997 = vst [vmem:[%s5275_s11 + $0xb0] sm:$0xff] %v2965_v2  ;;  %v2966_v17 = vmax.f32 %v2934_v61, 0.0 }
 0x220   : > { %2995 = vst [vmem:[%s5275_s11 + $0xa0] sm:$0xff] %v2963_v56  ;;  %v2964_v34 = vmax.f32 %v2932_v53, 0.0  ;;  %v3653_v37 = vpop.f32.mrb[24].mxu1  ;;  %v3789_v41 = vpop.f32.mrb[24].mxu0 }
 0x221   : > { %2998 = vst [vmem:[%s5275_s11 + $0xb8] sm:$0xff] %v2966_v17  ;;  %v3821_v50 = vadd.f32 %v3789_v41, %v3653_v37  ;;  %v1983_v20 = vpop.f32.mrb[25].mxu1  ;;  %v2841_v0 = vpop.f32.mrb[25].mxu0 }
 0x222   : > { %2996 = vst [vmem:[%s5275_s11 + $0xa8] sm:$0xff] %v2964_v34  ;;  %v3822_v22 = vadd.f32 %v2841_v0, %v1983_v20  ;;  %v3654_v30 = vpop.f32.mrb[26].mxu1  ;;  %v3790_v57 = vpop.f32.mrb[26].mxu0 }
 0x223   : > { %v2937_v62 = vadd.f32 %v3821_v50, %v5267_v16  ;;  %v3823_v63 = vadd.f32 %v3790_v57, %v3654_v30  ;;  %v1986_v5 = vpop.f32.mrb[27].mxu1  ;;  %v2844_v49 = vpop.f32.mrb[27].mxu0 }
 0x224   : > { %v2935_v54 = vadd.f32 %v3822_v22, %v5267_v16  ;;  %v3824_v36 = vadd.f32 %v2844_v49, %v1986_v5 }
 0x225   : > { %v2969_v45 = vmax.f32 %v2937_v62, 0.0  ;;  %v2938_v31 = vadd.f32 %v3823_v63, %v5267_v16 }
 0x226   : > { %v2967_v26 = vmax.f32 %v2935_v54, 0.0  ;;  %v2936_v29 = vadd.f32 %v3824_v36, %v5267_v16 }
 0x227   : > { %3001 = vst [vmem:[%s5275_s11 + $0xd0] sm:$0xff] %v2969_v45  ;;  %v2970_v44 = vmax.f32 %v2938_v31, 0.0 }
 0x228   : > { %2999 = vst [vmem:[%s5275_s11 + $0xc0] sm:$0xff] %v2967_v26  ;;  %v2968_v19 = vmax.f32 %v2936_v29, 0.0  ;;  %v3657_v52 = vpop.f32.mrb[28].mxu1  ;;  %v3793_v8 = vpop.f32.mrb[28].mxu0 }
 0x229   : > { %3002 = vst [vmem:[%s5275_s11 + $0xd8] sm:$0xff] %v2970_v44  ;;  %v3825_v3 = vadd.f32 %v3793_v8, %v3657_v52  ;;  %v1999_v4 = vpop.f32.mrb[29].mxu1  ;;  %v2857_v11 = vpop.f32.mrb[29].mxu0 }
 0x22a   : > { %3000 = vst [vmem:[%s5275_s11 + $0xc8] sm:$0xff] %v2968_v19  ;;  %v3826_v1 = vadd.f32 %v2857_v11, %v1999_v4  ;;  %v3658_v21 = vpop.f32.mrb[30].mxu1  ;;  %v3794_v13 = vpop.f32.mrb[30].mxu0 }
 0x22b   : > { %v2941_v40 = vadd.f32 %v3825_v3, %v5267_v16  ;;  %v3827_v24 = vadd.f32 %v3794_v13, %v3658_v21  ;;  %v2002_v9 = vpop.f32.mrb[31].mxu1  ;;  %v2860_v10 = vpop.f32.mrb[31].mxu0 }
 0x22c   : > { %v2939_v51 = vadd.f32 %v3826_v1, %v5267_v16  ;;  %v3828_v33 = vadd.f32 %v2860_v10, %v2002_v9 }
 0x22d   : > { %v2973_v39 = vmax.f32 %v2941_v40, 0.0  ;;  %v2942_v58 = vadd.f32 %v3827_v24, %v5267_v16 }
 0x22e   : > { %v2971_v42 = vmax.f32 %v2939_v51, 0.0  ;;  %v2940_v15 = vadd.f32 %v3828_v33, %v5267_v16 }
 0x22f   : > { %3005 = vst [vmem:[%s5275_s11 + $0xf0] sm:$0xff] %v2973_v39  ;;  %v2974_v27 = vmax.f32 %v2942_v58, 0.0 }
 0x230   : > { %3003 = vst [vmem:[%s5275_s11 + $0xe0] sm:$0xff] %v2971_v42  ;;  %v2972_v6 = vmax.f32 %v2940_v15, 0.0 }
 0x231   : > { %3006 = vst [vmem:[%s5275_s11 + $0xf8] sm:$0xff] %v2974_v27 }
 0x232   : > { %3004 = vst [vmem:[%s5275_s11 + $0xe8] sm:$0xff] %v2972_v6 }
 0x233   : > { %4156 = shalt.err (!%p4153_p5)
}
 0x234   : > { %s4157_s4 = scalar_lea.hbm %s5343_s26, 4096  ;;  %s4161_s7 = scalar_lea.hbm %s5401_s3, 8192 }
 0x235   : > { %p4158_p6 = scmp.ne.s32.totalorder %s5343_s26, %s4157_s4  ;;  %p4162_p10 = scmp.lt.u32.totalorder %s5343_s26, %s5401_s3 }
 0x236   : > { %p4163_p11 = scmp.lt.u32.totalorder %s4161_s7, %s4157_s4  ;;  %p4165_p13 = scmp.lt.u32.totalorder %s4157_s4, %s5343_s26 }
 0x237   : > { %p4159_p7 = pnand %p4158_p6, %p4286_p4 }
 0x238   : > { %p4164_p12 = por %p4163_p11, %p4162_p10 }
 0x239   : > { %p4160_p9 = pneg %p4159_p7 }
 0x23a   : > { %p4166_p0 = por %p4165_p13, %p4164_p12 }
 0x23c   : > { %p4167_p1 = pnand %p4166_p0, %p4160_p9 }
 0x23e   : > { %4170 = shalt.err (!%p4167_p1)
}
 0x23f   : > { %s4224_s10 = smov 128   ;;  %s4225_s11 = smov 8  }
 0x240   : > { %4064 = dma.vmem_to_hbm [thread:$0]  (%p4286_p4), %s5345_s19, 4096, %s5343_s26, %s5352_s15, %s4224_s10, %s4224_s10, %s4225_s11  }
 0x241 PF: > { %p4070_p2 = scmp.ge.s32.totalorder %s4221_s17, 2  ;;  %s3038_s18 = sand.u32 1, %s4201_s12  }
 0x242   : > { %s3039_s21 = scalar_lea.sflag [#allocation3], %s3038_s18 }
 0x243   : > { %p4067_p3 = pnand %p4070_p2, %p4293_p8 }
 0x245   : > { %4196 = dma.done.wait (!%p4067_p3), %s3039_s21, 4096  }
 0x246   : > { %4198 = vsyncadd (!%p4067_p3), %s3039_s21, 4294963200  ;;  %s16_s17 = sadd.s32 1, %s4221_s17   ;;  %s5481_s12 = smov %s4205_s13 }
 0x247   : > { %p13_p5 = scmp.ge.s32.totalorder %s16_s17, 4   ;;  %s5482_s13 = smov %s4209_s14 }
 0x248   : > { %s5483_s14 = smov %s4299_s25  ;;  %s5484_s15 = smov %s4217_s16 }
 0x249   : > { %s5485_s16 = smov %s5487_s20  ;;  %15 = sbr.rel (!%p13_p5) target bundleno = 4 (0x4), region = 76 }
 0x250   :  { %3044 = vsyncpa [#allocation3], 1 }
 0x251   :  { %3046 = vsyncpa [#allocation3 + $0x1], 1 }

</bundles_post_ra>
